<compile_context>
chip_gen: v6e
topology: v6e:2x2x1
jax: 0.10.0
libtpu: 0.0.40
codegen_flags: <defaults>
</compile_context>

<pallas_src>
import jax
import jax.numpy as jnp
from jax.experimental import pallas as pl
from jax.experimental.pallas import tpu as pltpu

_BF16 = jnp.bfloat16
_F32 = jnp.float32
_LANE = 128


def _round_up(a, b):
    return ((a + b - 1) // b) * b


def _vmem():
    return pl.BlockSpec(memory_space=pltpu.MemorySpace.VMEM)


def _smem():
    return pl.BlockSpec(memory_space=pltpu.MemorySpace.SMEM)


# ----------------------------------------------------------------------------
# Fused forward kernel (built as a closure over the static padded dims)
# ----------------------------------------------------------------------------

def _make_kernel(n_pad, in_pad, hid, pred_hid, out_pad):
    H, H2, P = hid, 2 * hid, pred_hid

    def kernel(seed_ref, x_ref, adj_ref, w_ref, b_ref, out_ref, stk_ref, col_ref):
        # ---- feature_transform + ReLU --------------------------------------
        h = jnp.dot(x_ref[...], w_ref[0, :in_pad, :H],
                    preferred_element_type=_F32)
        h = jnp.maximum(h + b_ref[0, :, :H], 0.0)                  # (N, H) f32

        # ---- both GCN blocks, fused -----------------------------------------
        # layer 0 weights fused 256-wide: (N,H) @ [w00 | w10] -> (N, 2H)
        hw = jnp.dot(h.astype(_BF16), w_ref[1, :H, :],
                     preferred_element_type=_F32)
        # column (N,2H) -> stacked (2N,H) for the block-diag adjacency matmul
        stk_ref[:n_pad, :] = hw[:, :H].astype(_BF16)
        stk_ref[n_pad:, :] = hw[:, H:].astype(_BF16)
        t_st = jnp.dot(adj_ref[...], stk_ref[...],
                       preferred_element_type=_F32)                # (2N, H) f32
        # stacked -> column, + folded-BN bias, inter-layer ReLU (dropout=id, eval)
        col_ref[:, :H] = t_st[:n_pad, :]
        col_ref[:, H:] = t_st[n_pad:, :]
        u = jnp.maximum(col_ref[...] + b_ref[1, :, :], 0.0)        # (N, 2H) f32

        # layer 1 weights as blockdiag(w01, w11): one 256-deep x 256-wide pass
        s_col = jnp.dot(u.astype(_BF16), w_ref[2, :, :],
                        preferred_element_type=_F32)               # (N, 2H)
        stk_ref[:n_pad, :] = s_col[:, :H].astype(_BF16)
        stk_ref[n_pad:, :] = s_col[:, H:].astype(_BF16)
        s_st = jnp.dot(adj_ref[...], stk_ref[...],
                       preferred_element_type=_F32)                # (2N, H)
        col_ref[:, :H] = s_st[:n_pad, :]
        col_ref[:, H:] = s_st[n_pad:, :]
        xcat = col_ref[...] + b_ref[2, :, :] + u                   # (N,2H)=[x0|x1]

        # ---- seed row via in-kernel one-hot (seed id lives in SMEM) ---------
        seed = seed_ref[0, 0]
        rows = jax.lax.broadcasted_iota(jnp.int32, (n_pad, 1), 0)
        oh = (rows == seed).astype(_F32)                           # (N, 1)
        seed_row = jnp.sum(xcat * oh, axis=0, keepdims=True)       # (1,2H)=[s0|s1]

        # ---- predictor: fc1 fused over [x0|x1]; seed half is a rank-1 term --
        zs = jnp.dot(seed_row.astype(_BF16), w_ref[4, :, :P],
                     preferred_element_type=_F32) + b_ref[3, :, :P]   # (1, P)
        z = jnp.dot(xcat.astype(_BF16), w_ref[3, :, :P],
                    preferred_element_type=_F32) + zs                 # (N, P)
        z = jnp.maximum(z, 0.0)
        z = jnp.dot(z.astype(_BF16), w_ref[5, :P, :P],
                    preferred_element_type=_F32) + b_ref[4, :, :P]
        z = jnp.maximum(z, 0.0)
        z = jnp.dot(z.astype(_BF16), w_ref[6, :P, :out_pad],
                    preferred_element_type=_F32) + b_ref[5, :, :out_pad]
        out_ref[...] = z                                            # (N, 128) f32

    return kernel


# ----------------------------------------------------------------------------
# Glue: normalized dense adjacency (PyG gcn_norm semantics) and BN folding
# ----------------------------------------------------------------------------

def normalized_adjacency(edge_index, edge_weight, mask, num_nodes):
    """Dense bf16 A_hat with A_hat[dst, src]; masked-out edges get weight 0."""
    w = jnp.where(mask, edge_weight, 0.0).astype(_F32)
    src, dst = edge_index[0], edge_index[1]
    a = jnp.zeros((num_nodes, num_nodes), _F32).at[dst, src].add(w)
    a = a + jnp.eye(num_nodes, dtype=_F32)                  # self loops, weight 1
    deg = a.sum(axis=1)
    d_inv_sqrt = jnp.where(deg > 0, jax.lax.rsqrt(deg), 0.0)
    return (d_inv_sqrt[:, None] * a * d_inv_sqrt[None, :]).astype(_BF16)


def _fold_bn(p, eps=1e-5):
    """Fold eval-mode BatchNorm1d into the GCNConv weight/bias (exact)."""
    scale = p["gamma"] * jax.lax.rsqrt(p["rvar"] + eps)      # (1, C)
    w = p["w"] * scale                                       # scale output columns
    b = (p["b"] - p["rmean"]) * scale + p["beta"]
    return w, b


# ----------------------------------------------------------------------------
# Full SeedGCN forward
# ----------------------------------------------------------------------------

def seed_gcn_forward(params, x, edge_index, edge_type, edge_weight, seed_node_id):
    n, in_c = x.shape
    hid = params["ft_w"].shape[1]
    pred_hid = params["pred"]["w2"].shape[0]
    out_c = params["pred"]["w3"].shape[1]

    assert hid % _LANE == 0 and pred_hid % _LANE == 0
    H2 = 2 * hid
    n_pad = _round_up(max(n, _LANE), _LANE)        # node dim -> multiple of 128
    in_pad = _round_up(in_c, _LANE)
    out_pad = _round_up(out_c, _LANE)
    assert in_pad <= H2 and pred_hid <= H2 and out_pad <= H2

    # padded nodes are isolated (only a self-loop) -> no effect on real rows
    x_p = jnp.zeros((n_pad, in_pad), _F32).at[:n, :in_c].set(x)

    # block-diagonal normalized adjacency (bf16 straight from the builder)
    adj0 = normalized_adjacency(edge_index, edge_weight, edge_type == 0, n_pad)
    adj1 = normalized_adjacency(edge_index, edge_weight, edge_type == 1, n_pad)
    adj_bd = (jnp.zeros((2 * n_pad, 2 * n_pad), _BF16)
              .at[:n_pad, :n_pad].set(adj0)
              .at[n_pad:, n_pad:].set(adj1))

    # fold BN into conv W/b (eval mode, zero numeric change)
    w00, b00 = _fold_bn(params["gcn_0"][0])
    w01, b01 = _fold_bn(params["gcn_0"][1])
    w10, b10 = _fold_bn(params["gcn_1"][0])
    w11, b11 = _fold_bn(params["gcn_1"][1])

    pr = params["pred"]
    w1 = pr["w1"]                       # (4H, P), concat order [x0 | x1 | s0 | s1]

    # coalesce all weights into one (7, 2H, 2H) bf16 stack (one DMA)
    w_all = jnp.zeros((7, H2, H2), _F32)
    w_all = w_all.at[0, :in_c, :hid].set(params["ft_w"])
    w_all = w_all.at[1, :hid, :hid].set(w00).at[1, :hid, hid:].set(w10)
    w_all = w_all.at[2, :hid, :hid].set(w01).at[2, hid:, hid:].set(w11)
    w_all = w_all.at[3, :, :pred_hid].set(w1[:H2])
    w_all = w_all.at[4, :, :pred_hid].set(w1[H2:])
    w_all = w_all.at[5, :pred_hid, :pred_hid].set(pr["w2"])
    w_all = w_all.at[6, :pred_hid, :out_c].set(pr["w3"])
    w_all = w_all.astype(_BF16)

    # coalesce all biases into one (6, 1, 2H) f32 stack (one DMA)
    b_all = jnp.zeros((6, 1, H2), _F32)
    b_all = b_all.at[0, 0, :hid].set(params["ft_b"][0])
    b_all = b_all.at[1, 0, :hid].set(b00[0]).at[1, 0, hid:].set(b10[0])
    b_all = b_all.at[2, 0, :hid].set(b01[0]).at[2, 0, hid:].set(b11[0])
    b_all = b_all.at[3, 0, :pred_hid].set(pr["b1"][0])
    b_all = b_all.at[4, 0, :pred_hid].set(pr["b2"][0])
    b_all = b_all.at[5, 0, :out_c].set(pr["b3"][0])

    seed_arr = jnp.reshape(jnp.asarray(seed_node_id, jnp.int32), (1, 1))

    n2 = 2 * n_pad
    flops = int(2 * n_pad * in_pad * hid
                + 2 * n_pad * hid * H2              # fused layer-0 weights
                + 2 * (2 * n2 * n2 * hid)           # two block-diag adj matmuls
                + 2 * n_pad * H2 * H2               # block-diag layer-1 weights
                + 2 * n_pad * H2 * pred_hid         # fc1 (x part)
                + 2 * n_pad * pred_hid * pred_hid   # fc2
                + 2 * n_pad * pred_hid * out_pad)   # fc3
    bytes_accessed = int(2 * n2 * n2 + 2 * n_pad * in_pad
                         + 2 * 7 * H2 * H2 + 4 * 6 * H2
                         + 4 * n_pad * out_pad)

    kernel = _make_kernel(n_pad, in_pad, hid, pred_hid, out_pad)

    out_full = pl.pallas_call(
        kernel,
        out_shape=jax.ShapeDtypeStruct((n_pad, out_pad), _F32),
        in_specs=[_smem(), _vmem(), _vmem(), _vmem(), _vmem()],
        out_specs=_vmem(),
        scratch_shapes=[pltpu.VMEM((2 * n_pad, hid), _BF16),    # stacked view
                        pltpu.VMEM((n_pad, H2), _F32)],         # column view
        cost_estimate=pl.CostEstimate(flops=flops, transcendentals=0,
                                      bytes_accessed=bytes_accessed),
    )(seed_arr, x_p.astype(_BF16), adj_bd, w_all, b_all)

    out = out_full[:n, :out_c]
    return out[:, 0] if out_c == 1 else out


# ----------------------------------------------------------------------------
# Deterministic parameter initialization
# ----------------------------------------------------------------------------

def init_params(key, in_channels, hidden, pred_hidden, out_channels,
                n_layers_0=2, n_layers_1=2):
    keys = iter(jax.random.split(key, 32))

    def lin(k, fan_in, fan_out):
        scale = 1.0 / jnp.sqrt(jnp.float32(fan_in))
        w = jax.random.uniform(k, (fan_in, fan_out), jnp.float32, -scale, scale)
        b = jnp.zeros((1, fan_out), jnp.float32)
        return w, b

    def gcn_layer_params(k, c):
        w, b = lin(k, c, c)
        return dict(w=w, b=b,
                    gamma=jnp.ones((1, c), jnp.float32),
                    beta=jnp.zeros((1, c), jnp.float32),
                    rmean=jnp.zeros((1, c), jnp.float32),
                    rvar=jnp.ones((1, c), jnp.float32))

    ft_w, ft_b = lin(next(keys), in_channels, hidden)
    gcn_0 = [gcn_layer_params(next(keys), hidden) for _ in range(n_layers_0)]
    gcn_1 = [gcn_layer_params(next(keys), hidden) for _ in range(n_layers_1)]

    pin = 4 * hidden                      # use_cross_attention=False
    w1, b1 = lin(next(keys), pin, pred_hidden)
    w2, b2 = lin(next(keys), pred_hidden, pred_hidden)
    w3, b3 = lin(next(keys), pred_hidden, out_channels)

    return dict(ft_w=ft_w, ft_b=ft_b, gcn_0=gcn_0, gcn_1=gcn_1,
                pred=dict(w1=w1, b1=b1, w2=w2, b2=b2, w3=w3, b3=b3))


# ----------------------------------------------------------------------------
# Main
# ----------------------------------------------------------------------------

if __name__ == "__main__":
    N = 64            # nodes
    IN_C = 16         # input feature channels
    HID = 128         # hidden channels (lane-dense)
    PRED_HID = 128    # predictor hidden (lane-dense)
    OUT_C = 1         # output channels
    E = 256           # number of edges

    key = jax.random.PRNGKey(0)
    k_par, k_x, k_src, k_dst, k_type, k_w = jax.random.split(key, 6)

    params = init_params(k_par, IN_C, HID, PRED_HID, OUT_C)

    x = jax.random.normal(k_x, (N, IN_C), jnp.float32)
    src = jax.random.randint(k_src, (E,), 0, N)
    dst = jax.random.randint(k_dst, (E,), 0, N)
    edge_index = jnp.stack([src, dst], axis=0)               # (2, E)
    edge_type = jax.random.randint(k_type, (E,), 0, 2)       # 0 or 1
    edge_weight = jax.random.uniform(k_w, (E,), jnp.float32, 0.5, 1.5)
    seed_node_id = jnp.int32(3)

    fwd = jax.jit(seed_gcn_forward)
    out = jax.block_until_ready(
        fwd(params, x, edge_index, edge_type, edge_weight, seed_node_id))

    assert out.shape == (N,), out.shape
    assert jnp.all(jnp.isfinite(out))
    print("KERNEL_OK")
</pallas_src>

<mosaic_0001>
module attributes {stable_mosaic.version = 11 : i64} {
  func.func private @main(%arg0: i32) attributes {dimension_semantics = [#tpu.dimension_semantics<core_parallel>], iteration_bounds = array<i64: 2>, tpu.core_type = #tpu.core_type<sc_scalar_subcore>, window_params = []} {
    return
  }
}

module attributes {stable_mosaic.version = 11 : i64} {
  func.func private @main(%arg0: i32) attributes {dimension_semantics = [#tpu.dimension_semantics<core_parallel>], iteration_bounds = array<i64: 2>, tpu.core_type = #tpu.core_type<sc_scalar_subcore>, window_params = []} {
    return
  }
}

module attributes {stable_mosaic.version = 11 : i64} {
  func.func @kernel(%arg0: memref<1x1xi32, #tpu.memory_space<smem>>, %arg1: memref<128x128xbf16, #tpu.memory_space<vmem>>, %arg2: memref<256x256xbf16, #tpu.memory_space<vmem>>, %arg3: memref<7x256x256xbf16, #tpu.memory_space<vmem>>, %arg4: memref<6x1x256xf32, #tpu.memory_space<vmem>>, %arg5: memref<128x128xf32, #tpu.memory_space<vmem>>, %arg6: memref<256x128xbf16, #tpu.memory_space<vmem>>, %arg7: memref<128x256xf32, #tpu.memory_space<vmem>>) attributes {dimension_semantics = [], scalar_prefetch = 0 : i64, scratch_operands = 2 : i64, tpu.core_type = #tpu.core_type<tc>} {
    %c0 = arith.constant 0 : index
    %c0_0 = arith.constant 0 : index
    %0 = vector.load %arg1[%c0, %c0_0] : memref<128x128xbf16, #tpu.memory_space<vmem>>, vector<128x128xbf16>
    %c0_1 = arith.constant 0 : index
    %c0_2 = arith.constant 0 : index
    %c0_3 = arith.constant 0 : index
    %1 = vector.load %arg3[%c0_1, %c0_2, %c0_3] : memref<7x256x256xbf16, #tpu.memory_space<vmem>>, vector<1x128x128xbf16>
    %2 = vector.shape_cast %1 : vector<1x128x128xbf16> to vector<128x128xbf16>
    %cst = arith.constant dense<0.000000e+00> : vector<128x128xf32>
    %3 = tpu.matmul %0, %2, %cst {dimension_numbers = #tpu.dot_dimension_numbers<[1], [0], [0], [1], [0, 0, 1, 1], [], []>} : vector<128x128xbf16>, vector<128x128xbf16>, vector<128x128xf32> -> vector<128x128xf32>
    %c0_4 = arith.constant 0 : index
    %c0_5 = arith.constant 0 : index
    %c0_6 = arith.constant 0 : index
    %4 = vector.load %arg4[%c0_4, %c0_5, %c0_6] : memref<6x1x256xf32, #tpu.memory_space<vmem>>, vector<1x1x128xf32>
    %5 = vector.shape_cast %4 : vector<1x1x128xf32> to vector<1x128xf32>
    %6 = vector.broadcast %5 : vector<1x128xf32> to vector<128x128xf32>
    %7 = arith.addf %3, %6 : vector<128x128xf32>
    %cst_7 = arith.constant 0.000000e+00 : f32
    %8 = vector.broadcast %cst_7 : f32 to vector<128x128xf32>
    %9 = arith.maximumf %7, %8 : vector<128x128xf32>
    %10 = arith.truncf %9 : vector<128x128xf32> to vector<128x128xbf16>
    %c1 = arith.constant 1 : index
    %c0_8 = arith.constant 0 : index
    %c0_9 = arith.constant 0 : index
    %11 = vector.load %arg3[%c1, %c0_8, %c0_9] : memref<7x256x256xbf16, #tpu.memory_space<vmem>>, vector<1x128x256xbf16>
    %12 = vector.shape_cast %11 : vector<1x128x256xbf16> to vector<128x256xbf16>
    %cst_10 = arith.constant dense<0.000000e+00> : vector<128x256xf32>
    %13 = tpu.matmul %10, %12, %cst_10 {dimension_numbers = #tpu.dot_dimension_numbers<[1], [0], [0], [1], [0, 0, 1, 1], [], []>} : vector<128x128xbf16>, vector<128x256xbf16>, vector<128x256xf32> -> vector<128x256xf32>
    %14 = vector.extract_strided_slice %13 {offsets = [0, 0], sizes = [128, 128], strides = [1, 1]} : vector<128x256xf32> to vector<128x128xf32>
    %15 = arith.truncf %14 : vector<128x128xf32> to vector<128x128xbf16>
    %c0_11 = arith.constant 0 : index
    %c0_12 = arith.constant 0 : index
    %16 = vector.load %arg6[%c0_11, %c0_12] : memref<256x128xbf16, #tpu.memory_space<vmem>>, vector<128x128xbf16>
    tpu.vector_store %arg6[%c0_11, %c0_12], %15 {strides = array<i32>} : memref<256x128xbf16, #tpu.memory_space<vmem>>, vector<128x128xbf16>,
    %17 = vector.extract_strided_slice %13 {offsets = [0, 128], sizes = [128, 128], strides = [1, 1]} : vector<128x256xf32> to vector<128x128xf32>
    %18 = arith.truncf %17 : vector<128x128xf32> to vector<128x128xbf16>
    %c128 = arith.constant 128 : index
    %c0_13 = arith.constant 0 : index
    %19 = vector.load %arg6[%c128, %c0_13] : memref<256x128xbf16, #tpu.memory_space<vmem>>, vector<128x128xbf16>
    tpu.vector_store %arg6[%c128, %c0_13], %18 {strides = array<i32>} : memref<256x128xbf16, #tpu.memory_space<vmem>>, vector<128x128xbf16>,
    %c0_14 = arith.constant 0 : index
    %c0_15 = arith.constant 0 : index
    %20 = vector.load %arg2[%c0_14, %c0_15] : memref<256x256xbf16, #tpu.memory_space<vmem>>, vector<256x256xbf16>
    %c0_16 = arith.constant 0 : index
    %c0_17 = arith.constant 0 : index
    %21 = vector.load %arg6[%c0_16, %c0_17] : memref<256x128xbf16, #tpu.memory_space<vmem>>, vector<256x128xbf16>
    %cst_18 = arith.constant dense<0.000000e+00> : vector<256x128xf32>
    %22 = tpu.matmul %20, %21, %cst_18 {dimension_numbers = #tpu.dot_dimension_numbers<[1], [0], [0], [1], [0, 0, 1, 1], [], []>} : vector<256x256xbf16>, vector<256x128xbf16>, vector<256x128xf32> -> vector<256x128xf32>
    %23 = vector.extract_strided_slice %22 {offsets = [0, 0], sizes = [128, 128], strides = [1, 1]} : vector<256x128xf32> to vector<128x128xf32>
    %c0_19 = arith.constant 0 : index
    %c0_20 = arith.constant 0 : index
    %24 = vector.load %arg7[%c0_19, %c0_20] : memref<128x256xf32, #tpu.memory_space<vmem>>, vector<128x128xf32>
    tpu.vector_store %arg7[%c0_19, %c0_20], %23 {strides = array<i32>} : memref<128x256xf32, #tpu.memory_space<vmem>>, vector<128x128xf32>,
    %25 = vector.extract_strided_slice %22 {offsets = [128, 0], sizes = [128, 128], strides = [1, 1]} : vector<256x128xf32> to vector<128x128xf32>
    %c0_21 = arith.constant 0 : index
    %c128_22 = arith.constant 128 : index
    %26 = vector.load %arg7[%c0_21, %c128_22] : memref<128x256xf32, #tpu.memory_space<vmem>>, vector<128x128xf32>
    tpu.vector_store %arg7[%c0_21, %c128_22], %25 {strides = array<i32>} : memref<128x256xf32, #tpu.memory_space<vmem>>, vector<128x128xf32>,
    %c0_23 = arith.constant 0 : index
    %c0_24 = arith.constant 0 : index
    %27 = vector.load %arg7[%c0_23, %c0_24] : memref<128x256xf32, #tpu.memory_space<vmem>>, vector<128x256xf32>
    %c1_25 = arith.constant 1 : index
    %c0_26 = arith.constant 0 : index
    %c0_27 = arith.constant 0 : index
    %28 = vector.load %arg4[%c1_25, %c0_26, %c0_27] : memref<6x1x256xf32, #tpu.memory_space<vmem>>, vector<1x1x256xf32>
    %29 = vector.shape_cast %28 : vector<1x1x256xf32> to vector<1x256xf32>
    %30 = vector.broadcast %29 : vector<1x256xf32> to vector<128x256xf32>
    %31 = arith.addf %27, %30 : vector<128x256xf32>
    %cst_28 = arith.constant 0.000000e+00 : f32
    %32 = vector.broadcast %cst_28 : f32 to vector<128x256xf32>
    %33 = arith.maximumf %31, %32 : vector<128x256xf32>
    %34 = arith.truncf %33 : vector<128x256xf32> to vector<128x256xbf16>
    %c2 = arith.constant 2 : index
    %c0_29 = arith.constant 0 : index
    %c0_30 = arith.constant 0 : index
    %35 = vector.load %arg3[%c2, %c0_29, %c0_30] : memref<7x256x256xbf16, #tpu.memory_space<vmem>>, vector<1x256x256xbf16>
    %36 = vector.shape_cast %35 : vector<1x256x256xbf16> to vector<256x256xbf16>
    %cst_31 = arith.constant dense<0.000000e+00> : vector<128x256xf32>
    %37 = tpu.matmul %34, %36, %cst_31 {dimension_numbers = #tpu.dot_dimension_numbers<[1], [0], [0], [1], [0, 0, 1, 1], [], []>} : vector<128x256xbf16>, vector<256x256xbf16>, vector<128x256xf32> -> vector<128x256xf32>
    %38 = vector.extract_strided_slice %37 {offsets = [0, 0], sizes = [128, 128], strides = [1, 1]} : vector<128x256xf32> to vector<128x128xf32>
    %39 = arith.truncf %38 : vector<128x128xf32> to vector<128x128xbf16>
    %c0_32 = arith.constant 0 : index
    %c0_33 = arith.constant 0 : index
    %40 = vector.load %arg6[%c0_32, %c0_33] : memref<256x128xbf16, #tpu.memory_space<vmem>>, vector<128x128xbf16>
    tpu.vector_store %arg6[%c0_32, %c0_33], %39 {strides = array<i32>} : memref<256x128xbf16, #tpu.memory_space<vmem>>, vector<128x128xbf16>,
    %41 = vector.extract_strided_slice %37 {offsets = [0, 128], sizes = [128, 128], strides = [1, 1]} : vector<128x256xf32> to vector<128x128xf32>
    %42 = arith.truncf %41 : vector<128x128xf32> to vector<128x128xbf16>
    %c128_34 = arith.constant 128 : index
    %c0_35 = arith.constant 0 : index
    %43 = vector.load %arg6[%c128_34, %c0_35] : memref<256x128xbf16, #tpu.memory_space<vmem>>, vector<128x128xbf16>
    tpu.vector_store %arg6[%c128_34, %c0_35], %42 {strides = array<i32>} : memref<256x128xbf16, #tpu.memory_space<vmem>>, vector<128x128xbf16>,
    %c0_36 = arith.constant 0 : index
    %c0_37 = arith.constant 0 : index
    %44 = vector.load %arg2[%c0_36, %c0_37] : memref<256x256xbf16, #tpu.memory_space<vmem>>, vector<256x256xbf16>
    %c0_38 = arith.constant 0 : index
    %c0_39 = arith.constant 0 : index
    %45 = vector.load %arg6[%c0_38, %c0_39] : memref<256x128xbf16, #tpu.memory_space<vmem>>, vector<256x128xbf16>
    %cst_40 = arith.constant dense<0.000000e+00> : vector<256x128xf32>
    %46 = tpu.matmul %44, %45, %cst_40 {dimension_numbers = #tpu.dot_dimension_numbers<[1], [0], [0], [1], [0, 0, 1, 1], [], []>} : vector<256x256xbf16>, vector<256x128xbf16>, vector<256x128xf32> -> vector<256x128xf32>
    %47 = vector.extract_strided_slice %46 {offsets = [0, 0], sizes = [128, 128], strides = [1, 1]} : vector<256x128xf32> to vector<128x128xf32>
    %c0_41 = arith.constant 0 : index
    %c0_42 = arith.constant 0 : index
    %48 = vector.load %arg7[%c0_41, %c0_42] : memref<128x256xf32, #tpu.memory_space<vmem>>, vector<128x128xf32>
    tpu.vector_store %arg7[%c0_41, %c0_42], %47 {strides = array<i32>} : memref<128x256xf32, #tpu.memory_space<vmem>>, vector<128x128xf32>,
    %49 = vector.extract_strided_slice %46 {offsets = [128, 0], sizes = [128, 128], strides = [1, 1]} : vector<256x128xf32> to vector<128x128xf32>
    %c0_43 = arith.constant 0 : index
    %c128_44 = arith.constant 128 : index
    %50 = vector.load %arg7[%c0_43, %c128_44] : memref<128x256xf32, #tpu.memory_space<vmem>>, vector<128x128xf32>
    tpu.vector_store %arg7[%c0_43, %c128_44], %49 {strides = array<i32>} : memref<128x256xf32, #tpu.memory_space<vmem>>, vector<128x128xf32>,
    %c0_45 = arith.constant 0 : index
    %c0_46 = arith.constant 0 : index
    %51 = vector.load %arg7[%c0_45, %c0_46] : memref<128x256xf32, #tpu.memory_space<vmem>>, vector<128x256xf32>
    %c2_47 = arith.constant 2 : index
    %c0_48 = arith.constant 0 : index
    %c0_49 = arith.constant 0 : index
    %52 = vector.load %arg4[%c2_47, %c0_48, %c0_49] : memref<6x1x256xf32, #tpu.memory_space<vmem>>, vector<1x1x256xf32>
    %53 = vector.shape_cast %52 : vector<1x1x256xf32> to vector<1x256xf32>
    %54 = vector.broadcast %53 : vector<1x256xf32> to vector<128x256xf32>
    %55 = arith.addf %51, %54 : vector<128x256xf32>
    %56 = arith.addf %55, %33 : vector<128x256xf32>
    %c0_50 = arith.constant 0 : index
    %c0_51 = arith.constant 0 : index
    %57 = memref.load %arg0[%c0_50, %c0_51] : memref<1x1xi32, #tpu.memory_space<smem>>
    %58 = tpu.iota {dimensions = array<i32: 0>} : vector<128x1xi32>
    %59 = vector.broadcast %57 : i32 to vector<128x1xi32>
    %60 = arith.cmpi eq, %58, %59 : vector<128x1xi32>
    %61 = arith.extui %60 : vector<128x1xi1> to vector<128x1xi32>
    %62 = arith.sitofp %61 : vector<128x1xi32> to vector<128x1xf32>
    %63 = vector.broadcast %62 : vector<128x1xf32> to vector<128x256xf32>
    %64 = arith.mulf %56, %63 : vector<128x256xf32>
    %cst_52 = arith.constant dense<0.000000e+00> : vector<256xf32>
    %65 = vector.multi_reduction <add>, %64, %cst_52 [0] : vector<128x256xf32> to vector<256xf32>
    %66 = vector.shape_cast %65 : vector<256xf32> to vector<1x256xf32>
    %67 = arith.truncf %66 : vector<1x256xf32> to vector<1x256xbf16>
    %c4 = arith.constant 4 : index
    %c0_53 = arith.constant 0 : index
    %c0_54 = arith.constant 0 : index
    %68 = vector.load %arg3[%c4, %c0_53, %c0_54] : memref<7x256x256xbf16, #tpu.memory_space<vmem>>, vector<1x256x128xbf16>
    %69 = vector.shape_cast %68 : vector<1x256x128xbf16> to vector<256x128xbf16>
    %cst_55 = arith.constant dense<0.000000e+00> : vector<1x128xf32>
    %70 = tpu.matmul %67, %69, %cst_55 {dimension_numbers = #tpu.dot_dimension_numbers<[1], [0], [0], [1], [0, 0, 1, 1], [], []>} : vector<1x256xbf16>, vector<256x128xbf16>, vector<1x128xf32> -> vector<1x128xf32>
    %c3 = arith.constant 3 : index
    %c0_56 = arith.constant 0 : index
    %c0_57 = arith.constant 0 : index
    %71 = vector.load %arg4[%c3, %c0_56, %c0_57] : memref<6x1x256xf32, #tpu.memory_space<vmem>>, vector<1x1x128xf32>
    %72 = vector.shape_cast %71 : vector<1x1x128xf32> to vector<1x128xf32>
    %73 = arith.addf %70, %72 : vector<1x128xf32>
    %74 = arith.truncf %56 : vector<128x256xf32> to vector<128x256xbf16>
    %c3_58 = arith.constant 3 : index
    %c0_59 = arith.constant 0 : index
    %c0_60 = arith.constant 0 : index
    %75 = vector.load %arg3[%c3_58, %c0_59, %c0_60] : memref<7x256x256xbf16, #tpu.memory_space<vmem>>, vector<1x256x128xbf16>
    %76 = vector.shape_cast %75 : vector<1x256x128xbf16> to vector<256x128xbf16>
    %cst_61 = arith.constant dense<0.000000e+00> : vector<128x128xf32>
    %77 = tpu.matmul %74, %76, %cst_61 {dimension_numbers = #tpu.dot_dimension_numbers<[1], [0], [0], [1], [0, 0, 1, 1], [], []>} : vector<128x256xbf16>, vector<256x128xbf16>, vector<128x128xf32> -> vector<128x128xf32>
    %78 = vector.broadcast %73 : vector<1x128xf32> to vector<128x128xf32>
    %79 = arith.addf %77, %78 : vector<128x128xf32>
    %cst_62 = arith.constant 0.000000e+00 : f32
    %80 = vector.broadcast %cst_62 : f32 to vector<128x128xf32>
    %81 = arith.maximumf %79, %80 : vector<128x128xf32>
    %82 = arith.truncf %81 : vector<128x128xf32> to vector<128x128xbf16>
    %c5 = arith.constant 5 : index
    %c0_63 = arith.constant 0 : index
    %c0_64 = arith.constant 0 : index
    %83 = vector.load %arg3[%c5, %c0_63, %c0_64] : memref<7x256x256xbf16, #tpu.memory_space<vmem>>, vector<1x128x128xbf16>
    %84 = vector.shape_cast %83 : vector<1x128x128xbf16> to vector<128x128xbf16>
    %cst_65 = arith.constant dense<0.000000e+00> : vector<128x128xf32>
    %85 = tpu.matmul %82, %84, %cst_65 {dimension_numbers = #tpu.dot_dimension_numbers<[1], [0], [0], [1], [0, 0, 1, 1], [], []>} : vector<128x128xbf16>, vector<128x128xbf16>, vector<128x128xf32> -> vector<128x128xf32>
    %c4_66 = arith.constant 4 : index
    %c0_67 = arith.constant 0 : index
    %c0_68 = arith.constant 0 : index
    %86 = vector.load %arg4[%c4_66, %c0_67, %c0_68] : memref<6x1x256xf32, #tpu.memory_space<vmem>>, vector<1x1x128xf32>
    %87 = vector.shape_cast %86 : vector<1x1x128xf32> to vector<1x128xf32>
    %88 = vector.broadcast %87 : vector<1x128xf32> to vector<128x128xf32>
    %89 = arith.addf %85, %88 : vector<128x128xf32>
    %cst_69 = arith.constant 0.000000e+00 : f32
    %90 = vector.broadcast %cst_69 : f32 to vector<128x128xf32>
    %91 = arith.maximumf %89, %90 : vector<128x128xf32>
    %92 = arith.truncf %91 : vector<128x128xf32> to vector<128x128xbf16>
    %c6 = arith.constant 6 : index
    %c0_70 = arith.constant 0 : index
    %c0_71 = arith.constant 0 : index
    %93 = vector.load %arg3[%c6, %c0_70, %c0_71] : memref<7x256x256xbf16, #tpu.memory_space<vmem>>, vector<1x128x128xbf16>
    %94 = vector.shape_cast %93 : vector<1x128x128xbf16> to vector<128x128xbf16>
    %cst_72 = arith.constant dense<0.000000e+00> : vector<128x128xf32>
    %95 = tpu.matmul %92, %94, %cst_72 {dimension_numbers = #tpu.dot_dimension_numbers<[1], [0], [0], [1], [0, 0, 1, 1], [], []>} : vector<128x128xbf16>, vector<128x128xbf16>, vector<128x128xf32> -> vector<128x128xf32>
    %c5_73 = arith.constant 5 : index
    %c0_74 = arith.constant 0 : index
    %c0_75 = arith.constant 0 : index
    %96 = vector.load %arg4[%c5_73, %c0_74, %c0_75] : memref<6x1x256xf32, #tpu.memory_space<vmem>>, vector<1x1x128xf32>
    %97 = vector.shape_cast %96 : vector<1x1x128xf32> to vector<1x128xf32>
    %98 = vector.broadcast %97 : vector<1x128xf32> to vector<128x128xf32>
    %99 = arith.addf %95, %98 : vector<128x128xf32>
    %c0_76 = arith.constant 0 : index
    %c0_77 = arith.constant 0 : index
    %100 = vector.load %arg5[%c0_76, %c0_77] : memref<128x128xf32, #tpu.memory_space<vmem>>, vector<128x128xf32>
    tpu.vector_store %arg5[%c0_76, %c0_77], %99 {strides = array<i32>} : memref<128x128xf32, #tpu.memory_space<vmem>>, vector<128x128xf32>,
    return
  }
}

</mosaic_0001>

<bundles_post_ra>
// kernel: seed_gcn_forward.1
= control target key start
LH: loop header
LB: loop body
LE: loop exit
PB: predicated region body
PF: predicated region fallthrough
CT: control target
= control target key end

     0   :  { %v4756_v32 = vmov 0   ;;  %s6057_s3 = inlined_call_operand.vmem [shape: bf16[7,256,256], index: 3, kind: input, shape index: {}]   ;;  %s6058_s1 = inlined_call_operand.vmem [shape: bf16[128,128], index: 1, kind: input, shape index: {}]   ;;  %s6059_s4 = inlined_call_operand.vmem [shape: f32[6,1,256], index: 4, kind: input, shape index: {}]   ;;  %s6060_s2 = inlined_call_operand.vmem [shape: bf16[256,256], index: 2, kind: input, shape index: {}]   ;;  %s6061_s0 = inlined_call_operand.<no memory space> [shape: s32[1,1], index: 0, kind: input, shape index: {}]   ;;  %s6062_s5 = inlined_call_operand.vmem [shape: f32[128,128], index: 5, kind: output, shape index: {}]  }
   0x1   :  { %v4492_v0 = vld [vmem:[%s6057_s3 + $0x70] ss:$8 sps:$4 sm:$0xff]   ;;  %v4493_v1 = vld [vmem:[%s6057_s3 + $0x60] ss:$8 sps:$4 sm:$0xff]   ;;  %v4508_v7 = vld [vmem:[%s6057_s3 + $0x174] ss:$8 sps:$4 sm:$0xff]   ;;  %407 = vmatprep.mubr.bf16.mxu1 %v4756_v32 }
   0x2   :  { %4394 = vmatprep.subr.bf16.mxu0 %v4492_v0  ;;  %v4494_v2 = vld [vmem:[%s6057_s3 + $0x50] ss:$8 sps:$4 sm:$0xff]   ;;  %v4495_v3 = vld [vmem:[%s6057_s3 + $0x40] ss:$8 sps:$4 sm:$0xff]   ;;  %375 = vmatprep.subr.bf16.mxu1 %v4508_v7  ;;  %v4511_v9 = vld [vmem:[%s6057_s3 + $0x164] ss:$8 sps:$4 sm:$0xff]  }
   0x3   :  { %4395 = vmatpush3.bf16.msra.mxu0 %v4492_v0  ;;  %v4500_v4 = vld [vmem:[%s6058_s1] sm:$0xff]   ;;  %v4496_v5 = vld [vmem:[%s6057_s3 + $0x30] ss:$8 sps:$4 sm:$0xff]   ;;  %v4514_v12 = vld [vmem:[%s6057_s3 + $0x154] ss:$8 sps:$4 sm:$0xff]  }
   0x4   :  { %4396 = vmatprep.subr.bf16.mxu0 %v4493_v1  ;;  %4410 = vmatprep.mubr.bf16.mxu0 %v4500_v4  ;;  %v4497_v6 = vld [vmem:[%s6057_s3 + $0x20] ss:$8 sps:$4 sm:$0xff]   ;;  %v4510_v8 = vld [vmem:[%s6057_s3 + $0x170] ss:$8 sps:$4 sm:$0xff]   ;;  %v4517_v15 = vld [vmem:[%s6057_s3 + $0x144] ss:$8 sps:$4 sm:$0xff]  }
   0x5   :  { %v4498_v10 = vld [vmem:[%s6057_s3 + $0x10] ss:$8 sps:$4 sm:$0xff]   ;;  %376 = vmatpush1.bf16.msra.mxu1 %v4510_v8  ;;  %v4513_v11 = vld [vmem:[%s6057_s3 + $0x160] ss:$8 sps:$4 sm:$0xff]   ;;  %v4520_v17 = vld [vmem:[%s6057_s3 + $0x134] ss:$8 sps:$4 sm:$0xff]  }
   0x6   :  { %377 = vmatprep.subr.bf16.mxu1 %v4511_v9  ;;  %v4499_v13 = vld [vmem:[%s6057_s3] ss:$8 sps:$4 sm:$0xff]   ;;  %v4516_v14 = vld [vmem:[%s6057_s3 + $0x150] ss:$8 sps:$4 sm:$0xff]   ;;  %v4523_v26 = vld [vmem:[%s6057_s3 + $0x124] ss:$8 sps:$4 sm:$0xff]  }
   0x7   :  { %4397 = vmatpush3.bf16.msra.mxu0 %v4493_v1  ;;  %v4519_v16 = vld [vmem:[%s6057_s3 + $0x140] ss:$8 sps:$4 sm:$0xff]   ;;  %v4502_v19 = vld [vmem:[%s6058_s1 + $0x10] sm:$0xff]   ;;  %v4503_v21 = vld [vmem:[%s6058_s1 + $0x18] sm:$0xff]  }
   0x8   :  { %4398 = vmatprep.subr.bf16.mxu0 %v4494_v2  ;;  %v4501_v18 = vld [vmem:[%s6058_s1 + $0x8] sm:$0xff]   ;;  %v4522_v20 = vld [vmem:[%s6057_s3 + $0x130] ss:$8 sps:$4 sm:$0xff]   ;;  %v4504_v22 = vld [vmem:[%s6058_s1 + $0x20] sm:$0xff]  }
   0x9   :  { %378 = vmatpush1.bf16.msra.mxu1 %v4513_v11  ;;  %v4505_v23 = vld [vmem:[%s6058_s1 + $0x28] sm:$0xff]   ;;  %v4506_v24 = vld [vmem:[%s6058_s1 + $0x30] sm:$0xff]   ;;  %v4507_v25 = vld [vmem:[%s6058_s1 + $0x38] sm:$0xff]  }
   0xa   :  { %379 = vmatprep.subr.bf16.mxu1 %v4514_v12  ;;  %v4525_v27 = vld [vmem:[%s6057_s3 + $0x120] ss:$8 sps:$4 sm:$0xff]   ;;  %v4526_v28 = vld [vmem:[%s6057_s3 + $0x114] ss:$8 sps:$4 sm:$0xff]   ;;  %v4528_v29 = vld [vmem:[%s6057_s3 + $0x110] ss:$8 sps:$4 sm:$0xff]  }
   0xb   :  { %4399 = vmatpush3.bf16.msra.mxu0 %v4494_v2  ;;  %v4529_v30 = vld [vmem:[%s6057_s3 + $0x104] ss:$8 sps:$4 sm:$0xff]   ;;  %v4531_v31 = vld [vmem:[%s6057_s3 + $0x100] ss:$8 sps:$4 sm:$0xff]  }
   0xc   :  { %4400 = vmatprep.subr.bf16.mxu0 %v4495_v3  ;;  %v3342_v35 = vld [vmem:[%s6059_s4] ss:$0 sm:$0xff] }
   0xd   :  { %380 = vmatpush1.bf16.msra.mxu1 %v4516_v14 }
   0xe   :  { %381 = vmatprep.subr.bf16.mxu1 %v4517_v15 }
   0xf   :  { %4401 = vmatpush3.bf16.msra.mxu0 %v4495_v3 }
  0x10   :  { %4402 = vmatprep.subr.bf16.mxu0 %v4496_v5 }
  0x11   :  { %382 = vmatpush1.bf16.msra.mxu1 %v4519_v16 }
  0x12   :  { %383 = vmatprep.subr.bf16.mxu1 %v4520_v17 }
  0x13   :  { %4403 = vmatpush3.bf16.msra.mxu0 %v4496_v5 }
  0x14   :  { %4404 = vmatprep.subr.bf16.mxu0 %v4497_v6 }
  0x15   :  { %384 = vmatpush1.bf16.msra.mxu1 %v4522_v20 }
  0x16   :  { %385 = vmatprep.subr.bf16.mxu1 %v4523_v26  ;;  %v4550_v26 = vld [vmem:[%s6060_s2 + $0x4] ss:$8 sps:$4 sm:$0xff]  }
  0x17   :  { %4405 = vmatpush3.bf16.msra.mxu0 %v4497_v6 }
  0x18   :  { %4406 = vmatprep.subr.bf16.mxu0 %v4498_v10 }
  0x19   :  { %386 = vmatpush1.bf16.msra.mxu1 %v4525_v27 }
  0x1a   :  { %387 = vmatprep.subr.bf16.mxu1 %v4526_v28 }
  0x1b   :  { %4407 = vmatpush3.bf16.msra.mxu0 %v4498_v10 }
  0x1c   :  { %4408 = vmatprep.subr.bf16.mxu0 %v4499_v13 }
  0x1d   :  { %388 = vmatpush1.bf16.msra.mxu1 %v4528_v29 }
  0x1e   :  { %389 = vmatprep.subr.bf16.mxu1 %v4529_v30 }
  0x1f   :  { %4409 = vmatpush3.bf16.msra.mxu0 %v4499_v13 }
  0x21   :  { %390 = vmatpush1.bf16.msra.mxu1 %v4531_v31 }
  0x22   :  { %4411 = vmatmul.mubr.bf16.vlgmr.msra.gmra.mxu0 %v4501_v18 }
  0x23   :  { %4414 = vmatprep.mubr.bf16.mxu0 %v4502_v19 }
  0x2a   :  { %4415 = vmatmul.mubr.bf16.gmra.mxu0 %v4503_v21 }
  0x2b   :  { %4418 = vmatprep.mubr.bf16.mxu0 %v4504_v22 }
  0x32   :  { %4419 = vmatmul.mubr.bf16.gmra.mxu0 %v4505_v23 }
  0x33   :  { %4422 = vmatprep.mubr.bf16.mxu0 %v4506_v24 }
  0x3a   :  { %4423 = vmatmul.mubr.bf16.gmra.mxu0 %v4507_v25 }
  0x3b   :  { %1000 = vmatprep.mubr.bf16.mxu0 %v4550_v26 }
  0xe2   :  { %v4412_v33 = vpop.f32.mrf.mxu0 }
  0xe3   :  { %v200_v47 = vadd.f32 %v4412_v33, %v3342_v35 }
  0xe4   :  { %v191_v34 = vpop.f32.mrf.mxu0 }
  0xe5   :  { %v192_v37 = vadd.f32 %v3342_v35, %v191_v34  ;;  %v256_v50 = vmax.f32 %v200_v47, 0.0 }
  0xe6   :  { %v4413_v36 = vpop.f32.mrf.mxu0 }
  0xe7   :  { %v254_v41 = vmax.f32 %v192_v37, 0.0  ;;  %v203_v44 = vadd.f32 %v4413_v36, %v3342_v35 }
  0xe8   :  { %v194_v38 = vpop.f32.mrf.mxu0 }
  0xe9   :  { %v195_v39 = vadd.f32 %v3342_v35, %v194_v38  ;;  %v257_v48 = vmax.f32 %v203_v44, 0.0 }
  0xea   :  { %v4416_v40 = vpop.f32.mrf.mxu0 }
  0xeb   :  { %v255_v42 = vmax.f32 %v195_v39, 0.0  ;;  %v271_v51 = vpack.c.bf16 %v257_v48, %v256_v50  ;;  %v216_v58 = vadd.f32 %v4416_v40, %v3342_v35 }
  0xec   :  { %v207_v43 = vpop.f32.mrf.mxu0 }
  0xed   :  { %v270_v45 = vpack.c.bf16 %v255_v42, %v254_v41  ;;  %v208_v52 = vadd.f32 %v3342_v35, %v207_v43  ;;  %v260_v62 = vmax.f32 %v216_v58, 0.0 }
  0xee   :  { %v4417_v46 = vpop.f32.mrf.mxu0 }
  0xef   :  { %408 = vmatmul.mubr.bf16.vlgmr.msra.gmra.mxu1 %v270_v45  ;;  %v258_v55 = vmax.f32 %v208_v52, 0.0  ;;  %v219_v59 = vadd.f32 %v4417_v46, %v3342_v35 }
  0xf0   :  { %417 = vmatprep.mubr.bf16.mxu1 %v4756_v32  ;;  %v210_v49 = vpop.f32.mrf.mxu0 }
  0xf1   :  { %v211_v53 = vadd.f32 %v3342_v35, %v210_v49  ;;  %v261_v63 = vmax.f32 %v219_v59, 0.0 }
  0xf2   :  { %v4420_v54 = vpop.f32.mrf.mxu0 }
  0xf3   :  { %v259_v56 = vmax.f32 %v211_v53, 0.0  ;;  %v273_v1 = vpack.c.bf16 %v261_v63, %v260_v62  ;;  %v232_v8 = vadd.f32 %v4420_v54, %v3342_v35 }
  0xf4   :  { %v223_v57 = vpop.f32.mrf.mxu0 }
  0xf5   :  { %v272_v60 = vpack.c.bf16 %v259_v56, %v258_v55  ;;  %v224_v2 = vadd.f32 %v3342_v35, %v223_v57  ;;  %v264_v12 = vmax.f32 %v232_v8, 0.0 }
  0xf6   :  { %v4421_v61 = vpop.f32.mrf.mxu0 }
  0xf7   :  { %418 = vmatmul.mubr.bf16.gmra.mxu1 %v271_v51  ;;  %v262_v5 = vmax.f32 %v224_v2, 0.0  ;;  %v235_v9 = vadd.f32 %v4421_v61, %v3342_v35 }
  0xf8   :  { %427 = vmatprep.mubr.bf16.mxu1 %v4756_v32  ;;  %v226_v0 = vpop.f32.mrf.mxu0 }
  0xf9   :  { %v227_v3 = vadd.f32 %v3342_v35, %v226_v0  ;;  %v265_v13 = vmax.f32 %v235_v9, 0.0 }
  0xfa   :  { %v4424_v4 = vpop.f32.mrf.mxu0 }
  0xfb   :  { %v263_v6 = vmax.f32 %v227_v3, 0.0  ;;  %v275_v15 = vpack.c.bf16 %v265_v13, %v264_v12  ;;  %v248_v20 = vadd.f32 %v4424_v4, %v3342_v35 }
  0xfc   :  { %v239_v7 = vpop.f32.mrf.mxu0 }
  0xfd   :  { %v274_v10 = vpack.c.bf16 %v263_v6, %v262_v5  ;;  %v240_v16 = vadd.f32 %v3342_v35, %v239_v7  ;;  %v268_v23 = vmax.f32 %v248_v20, 0.0 }
  0xfe   :  { %v4425_v11 = vpop.f32.mrf.mxu0 }
  0xff   :  { %428 = vmatmul.mubr.bf16.gmra.mxu1 %v272_v60  ;;  %v266_v18 = vmax.f32 %v240_v16, 0.0  ;;  %v251_v21 = vadd.f32 %v4425_v11, %v3342_v35 }
 0x100   :  { %437 = vmatprep.mubr.bf16.mxu1 %v4756_v32  ;;  %v242_v14 = vpop.f32.mrf.mxu0 }
 0x101   :  { %v243_v17 = vadd.f32 %v3342_v35, %v242_v14  ;;  %v269_v24 = vmax.f32 %v251_v21, 0.0 }
 0x103   :  { %v267_v19 = vmax.f32 %v243_v17, 0.0  ;;  %v277_v25 = vpack.c.bf16 %v269_v24, %v268_v23 }
 0x105   :  { %v276_v22 = vpack.c.bf16 %v267_v19, %v266_v18 }
 0x107   :  { %438 = vmatmul.mubr.bf16.gmra.mxu1 %v273_v1 }
 0x108   :  { %447 = vmatprep.mubr.bf16.mxu1 %v4756_v32 }
 0x10f   :  { %448 = vmatmul.mubr.bf16.gmra.mxu1 %v274_v10 }
 0x110   :  { %457 = vmatprep.mubr.bf16.mxu1 %v4756_v32 }
 0x117   :  { %458 = vmatmul.mubr.bf16.gmra.mxu1 %v275_v15 }
 0x118   :  { %467 = vmatprep.mubr.bf16.mxu1 %v4756_v32 }
 0x11f   :  { %468 = vmatmul.mubr.bf16.gmra.mxu1 %v276_v22 }
 0x120   :  { %477 = vmatprep.mubr.bf16.mxu1 %v4756_v32 }
 0x127   :  { %478 = vmatmul.mubr.bf16.gmra.mxu1 %v277_v25 }
 0x1af   :  { %v409_v27 = vpop.f32.mrf.mxu1 }
 0x1b1   :  { %v411_v28 = vpop.f32.mrf.mxu1 }
 0x1b3   :  { %v413_v29 = vpop.f32.mrf.mxu1 }
 0x1b4   :  { %v3849_v30 = vpack.c.bf16 %v413_v29, %v409_v27  ;;  %v4548_v27 = vld [vmem:[%s6060_s2] ss:$8 sps:$4 sm:$0xff]   ;;  %v4553_v29 = vld [vmem:[%s6060_s2 + $0x10] ss:$8 sps:$4 sm:$0xff]  }
 0x1b5   :  { %v415_v31 = vpop.f32.mrf.mxu1 }
 0x1b6   :  { %3850 = vst [vmem:[#allocation2] sm:$0xff] %v3849_v30   ;;  %v3889_v33 = vpack.c.bf16 %v415_v31, %v411_v28  ;;  %v4551_v28 = vld [vmem:[%s6060_s2 + $0x14] ss:$8 sps:$4 sm:$0xff]   ;;  %v4554_v30 = vld [vmem:[%s6060_s2 + $0x24] ss:$8 sps:$4 sm:$0xff]  }
 0x1b7   :  { %v419_v34 = vpop.f32.mrf.mxu1  ;;  %v4556_v31 = vld [vmem:[%s6060_s2 + $0x20] ss:$8 sps:$4 sm:$0xff]  }
 0x1b8   :  { %4013 = vst [vmem:[#allocation2 + $0x40] sm:$0xff] %v3889_v33   ;;  %v4557_v33 = vld [vmem:[%s6060_s2 + $0x34] ss:$8 sps:$4 sm:$0xff]  }
 0x1b9   :  { %v421_v35 = vpop.f32.mrf.mxu1 }
 0x1bb   :  { %v423_v32 = vpop.f32.mrf.mxu1 }
 0x1bc   :  { %v3854_v36 = vpack.c.bf16 %v423_v32, %v419_v34  ;;  %v4559_v34 = vld [vmem:[%s6060_s2 + $0x30] ss:$8 sps:$4 sm:$0xff]   ;;  %v4562_v32 = vld [vmem:[%s6060_s2 + $0x40] ss:$8 sps:$4 sm:$0xff]  }
 0x1bd   :  { %v425_v37 = vpop.f32.mrf.mxu1  ;;  %v4547_v26 = vld [vmem:[#allocation2] sm:$0xff]  }
 0x1be   :  { %4006 = vst [vmem:[#allocation2 + $0x8] sm:$0xff] %v3854_v36   ;;  %v3894_v38 = vpack.c.bf16 %v425_v37, %v421_v35  ;;  %v4560_v35 = vld [vmem:[%s6060_s2 + $0x44] ss:$8 sps:$4 sm:$0xff]   ;;  %v4563_v36 = vld [vmem:[%s6060_s2 + $0x54] ss:$8 sps:$4 sm:$0xff]  }
 0x1bf   :  { %v429_v39 = vpop.f32.mrf.mxu1  ;;  %v4546_v25 = vld [vmem:[#allocation2 + $0x40] sm:$0xff]   ;;  %v4565_v37 = vld [vmem:[%s6060_s2 + $0x50] ss:$8 sps:$4 sm:$0xff]  }
 0x1c0   :  { %4014 = vst [vmem:[#allocation2 + $0x48] sm:$0xff] %v3894_v38   ;;  %v4566_v38 = vld [vmem:[%s6060_s2 + $0x64] ss:$8 sps:$4 sm:$0xff]  }
 0x1c1   :  { %v431_v40 = vpop.f32.mrf.mxu1 }
 0x1c3   :  { %v433_v41 = vpop.f32.mrf.mxu1 }
 0x1c4   :  { %v3859_v42 = vpack.c.bf16 %v433_v41, %v429_v39  ;;  %v4568_v39 = vld [vmem:[%s6060_s2 + $0x60] ss:$8 sps:$4 sm:$0xff]   ;;  %v4571_v41 = vld [vmem:[%s6060_s2 + $0x70] ss:$8 sps:$4 sm:$0xff]  }
 0x1c5   :  { %v435_v43 = vpop.f32.mrf.mxu1  ;;  %v4545_v24 = vld [vmem:[#allocation2 + $0x8] sm:$0xff]  }
 0x1c6   :  { %4007 = vst [vmem:[#allocation2 + $0x10] sm:$0xff] %v3859_v42   ;;  %v3899_v44 = vpack.c.bf16 %v435_v43, %v431_v40  ;;  %v4569_v40 = vld [vmem:[%s6060_s2 + $0x74] ss:$8 sps:$4 sm:$0xff]   ;;  %v4572_v42 = vld [vmem:[%s6060_s2 + $0x84] ss:$8 sps:$4 sm:$0xff]  }
 0x1c7   :  { %v439_v45 = vpop.f32.mrf.mxu1  ;;  %v4544_v23 = vld [vmem:[#allocation2 + $0x48] sm:$0xff]  }
 0x1c8   :  { %4015 = vst [vmem:[#allocation2 + $0x50] sm:$0xff] %v3899_v44   ;;  %v4574_v43 = vld [vmem:[%s6060_s2 + $0x80] ss:$8 sps:$4 sm:$0xff]   ;;  %v4575_v44 = vld [vmem:[%s6060_s2 + $0x94] ss:$8 sps:$4 sm:$0xff]  }
 0x1c9   :  { %v441_v46 = vpop.f32.mrf.mxu1 }
 0x1cb   :  { %v443_v47 = vpop.f32.mrf.mxu1 }
 0x1cc   :  { %v3864_v48 = vpack.c.bf16 %v443_v47, %v439_v45  ;;  %v4577_v45 = vld [vmem:[%s6060_s2 + $0x90] ss:$8 sps:$4 sm:$0xff]   ;;  %v4580_v47 = vld [vmem:[%s6060_s2 + $0xa0] ss:$8 sps:$4 sm:$0xff]  }
 0x1cd   :  { %v445_v49 = vpop.f32.mrf.mxu1  ;;  %v4543_v22 = vld [vmem:[#allocation2 + $0x10] sm:$0xff]  }
 0x1ce   :  { %4008 = vst [vmem:[#allocation2 + $0x18] sm:$0xff] %v3864_v48   ;;  %v3904_v50 = vpack.c.bf16 %v445_v49, %v441_v46  ;;  %v4578_v46 = vld [vmem:[%s6060_s2 + $0xa4] ss:$8 sps:$4 sm:$0xff]   ;;  %v4581_v48 = vld [vmem:[%s6060_s2 + $0xb4] ss:$8 sps:$4 sm:$0xff]  }
 0x1cf   :  { %v449_v51 = vpop.f32.mrf.mxu1  ;;  %v4542_v21 = vld [vmem:[#allocation2 + $0x50] sm:$0xff]  }
 0x1d0   :  { %4016 = vst [vmem:[#allocation2 + $0x58] sm:$0xff] %v3904_v50   ;;  %v4598_v49 = vld [vmem:[%s6057_s3 + $0x274] ss:$8 sps:$4 sm:$0xff]   ;;  %v4596_v50 = vld [vmem:[%s6057_s3 + $0x270] ss:$8 sps:$4 sm:$0xff]  }
 0x1d1   :  { %v451_v52 = vpop.f32.mrf.mxu1  ;;  %1479 = vmatprep.subr.bf16.mxu1 %v4598_v49 }
 0x1d2   :  { %1480 = vmatpush1.bf16.msra.mxu1 %v4596_v50 }
 0x1d3   :  { %v453_v53 = vpop.f32.mrf.mxu1 }
 0x1d4   :  { %v3869_v54 = vpack.c.bf16 %v453_v53, %v449_v51  ;;  %v4601_v51 = vld [vmem:[%s6057_s3 + $0x264] ss:$8 sps:$4 sm:$0xff]   ;;  %v4583_v53 = vld [vmem:[%s6060_s2 + $0xb0] ss:$8 sps:$4 sm:$0xff]  }
 0x1d5   :  { %v455_v55 = vpop.f32.mrf.mxu1  ;;  %v4541_v20 = vld [vmem:[#allocation2 + $0x18] sm:$0xff]   ;;  %1481 = vmatprep.subr.bf16.mxu1 %v4601_v51 }
 0x1d6   :  { %4009 = vst [vmem:[#allocation2 + $0x20] sm:$0xff] %v3869_v54   ;;  %v3909_v56 = vpack.c.bf16 %v455_v55, %v451_v52  ;;  %v4599_v52 = vld [vmem:[%s6057_s3 + $0x260] ss:$8 sps:$4 sm:$0xff]   ;;  %v4584_v54 = vld [vmem:[%s6060_s2 + $0xc4] ss:$8 sps:$4 sm:$0xff]  }
 0x1d7   :  { %v459_v57 = vpop.f32.mrf.mxu1  ;;  %v4540_v19 = vld [vmem:[#allocation2 + $0x58] sm:$0xff]   ;;  %1482 = vmatpush1.bf16.msra.mxu1 %v4599_v52 }
 0x1d8   :  { %4017 = vst [vmem:[#allocation2 + $0x60] sm:$0xff] %v3909_v56   ;;  %v4604_v55 = vld [vmem:[%s6057_s3 + $0x254] ss:$8 sps:$4 sm:$0xff]   ;;  %v4602_v56 = vld [vmem:[%s6057_s3 + $0x250] ss:$8 sps:$4 sm:$0xff]  }
 0x1d9   :  { %v461_v58 = vpop.f32.mrf.mxu1  ;;  %1483 = vmatprep.subr.bf16.mxu1 %v4604_v55 }
 0x1db   :  { %v463_v59 = vpop.f32.mrf.mxu1  ;;  %1484 = vmatpush1.bf16.msra.mxu1 %v4602_v56 }
 0x1dc   :  { %v3874_v60 = vpack.c.bf16 %v463_v59, %v459_v57  ;;  %v4607_v57 = vld [vmem:[%s6057_s3 + $0x244] ss:$8 sps:$4 sm:$0xff]   ;;  %v4586_v59 = vld [vmem:[%s6060_s2 + $0xc0] ss:$8 sps:$4 sm:$0xff]  }
 0x1dd   :  { %v465_v61 = vpop.f32.mrf.mxu1  ;;  %v4539_v18 = vld [vmem:[#allocation2 + $0x20] sm:$0xff]   ;;  %1485 = vmatprep.subr.bf16.mxu1 %v4607_v57 }
 0x1de   :  { %4010 = vst [vmem:[#allocation2 + $0x28] sm:$0xff] %v3874_v60   ;;  %v3914_v62 = vpack.c.bf16 %v465_v61, %v461_v58  ;;  %v4605_v58 = vld [vmem:[%s6057_s3 + $0x240] ss:$8 sps:$4 sm:$0xff]   ;;  %v4587_v60 = vld [vmem:[%s6060_s2 + $0xd4] ss:$8 sps:$4 sm:$0xff]  }
 0x1df   :  { %v469_v63 = vpop.f32.mrf.mxu1  ;;  %v4538_v17 = vld [vmem:[#allocation2 + $0x60] sm:$0xff]   ;;  %1486 = vmatpush1.bf16.msra.mxu1 %v4605_v58  ;;  %v4610_v61 = vld [vmem:[%s6057_s3 + $0x234] ss:$8 sps:$4 sm:$0xff]  }
 0x1e0   :  { %4018 = vst [vmem:[#allocation2 + $0x68] sm:$0xff] %v3914_v62   ;;  %v4608_v62 = vld [vmem:[%s6057_s3 + $0x230] ss:$8 sps:$4 sm:$0xff]   ;;  %1487 = vmatprep.subr.bf16.mxu1 %v4610_v61 }
 0x1e1   :  { %v471_v0 = vpop.f32.mrf.mxu1 }
 0x1e3   :  { %v473_v1 = vpop.f32.mrf.mxu1  ;;  %1488 = vmatpush1.bf16.msra.mxu1 %v4608_v62 }
 0x1e4   :  { %v3879_v2 = vpack.c.bf16 %v473_v1, %v469_v63  ;;  %v4613_v63 = vld [vmem:[%s6057_s3 + $0x224] ss:$8 sps:$4 sm:$0xff]   ;;  %v4589_v1 = vld [vmem:[%s6060_s2 + $0xd0] ss:$8 sps:$4 sm:$0xff]  }
 0x1e5   :  { %v475_v3 = vpop.f32.mrf.mxu1  ;;  %v4537_v16 = vld [vmem:[#allocation2 + $0x28] sm:$0xff]   ;;  %1489 = vmatprep.subr.bf16.mxu1 %v4613_v63 }
 0x1e6   :  { %4011 = vst [vmem:[#allocation2 + $0x30] sm:$0xff] %v3879_v2   ;;  %v3919_v4 = vpack.c.bf16 %v475_v3, %v471_v0  ;;  %v4611_v0 = vld [vmem:[%s6057_s3 + $0x220] ss:$8 sps:$4 sm:$0xff]   ;;  %v4590_v2 = vld [vmem:[%s6060_s2 + $0xe4] ss:$8 sps:$4 sm:$0xff]  }
 0x1e7   :  { %v479_v5 = vpop.f32.mrf.mxu1  ;;  %v4536_v15 = vld [vmem:[#allocation2 + $0x68] sm:$0xff]   ;;  %1490 = vmatpush1.bf16.msra.mxu1 %v4611_v0  ;;  %v4616_v3 = vld [vmem:[%s6057_s3 + $0x214] ss:$8 sps:$4 sm:$0xff]  }
 0x1e8   :  { %4019 = vst [vmem:[#allocation2 + $0x70] sm:$0xff] %v3919_v4   ;;  %v4614_v4 = vld [vmem:[%s6057_s3 + $0x210] ss:$8 sps:$4 sm:$0xff]   ;;  %1491 = vmatprep.subr.bf16.mxu1 %v4616_v3  ;;  %v1196_v3 = vlaneseq }
 0x1e9   :  { %v481_v6 = vpop.f32.mrf.mxu1 }
 0x1eb   :  { %v483_v7 = vpop.f32.mrf.mxu1  ;;  %1492 = vmatpush1.bf16.msra.mxu1 %v4614_v4 }
 0x1ec   :  { %v3884_v8 = vpack.c.bf16 %v483_v7, %v479_v5  ;;  %v4619_v5 = vld [vmem:[%s6057_s3 + $0x204] ss:$8 sps:$4 sm:$0xff]   ;;  %v4592_v7 = vld [vmem:[%s6060_s2 + $0xe0] ss:$8 sps:$4 sm:$0xff]  }
 0x1ed   :  { %v485_v9 = vpop.f32.mrf.mxu1  ;;  %v4535_v14 = vld [vmem:[#allocation2 + $0x30] sm:$0xff]   ;;  %1493 = vmatprep.subr.bf16.mxu1 %v4619_v5 }
 0x1ee   :  { %4012 = vst [vmem:[#allocation2 + $0x38] sm:$0xff] %v3884_v8   ;;  %v3924_v10 = vpack.c.bf16 %v485_v9, %v481_v6  ;;  %v4617_v6 = vld [vmem:[%s6057_s3 + $0x200] ss:$8 sps:$4 sm:$0xff]   ;;  %v4593_v8 = vld [vmem:[%s6060_s2 + $0xf4] ss:$8 sps:$4 sm:$0xff]  }
 0x1ef   :  { %v4534_v13 = vld [vmem:[#allocation2 + $0x70] sm:$0xff]   ;;  %1494 = vmatpush1.bf16.msra.mxu1 %v4617_v6 }
 0x1f0   :  { %4020 = vst [vmem:[#allocation2 + $0x78] sm:$0xff] %v3924_v10   ;;  %v4622_v9 = vld [vmem:[%s6057_s3 + $0x2f4] ss:$8 sps:$4 sm:$0xff]   ;;  %v4620_v10 = vld [vmem:[%s6057_s3 + $0x2f0] ss:$8 sps:$4 sm:$0xff]  }
 0x1f1   :  { %1495 = vmatprep.subr.bf16.mxu1 %v4622_v9 }
 0x1f3   :  { %1496 = vmatpush2.bf16.msra.mxu1 %v4620_v10 }
 0x1f5   :  { %v4533_v12 = vld [vmem:[#allocation2 + $0x38] sm:$0xff]  }
 0x1f7   :  { %v4532_v11 = vld [vmem:[#allocation2 + $0x78] sm:$0xff]  }
 0x1f8   :  { %4052 = vmatprep.subr.bf16.mxu0 %v4532_v11  ;;  %v4625_v11 = vld [vmem:[%s6057_s3 + $0x2e4] ss:$8 sps:$4 sm:$0xff]  }
 0x1f9   :  { %4053 = vmatpush3.bf16.msra.mxu0 %v4533_v12  ;;  %v4623_v12 = vld [vmem:[%s6057_s3 + $0x2e0] ss:$8 sps:$4 sm:$0xff]   ;;  %1497 = vmatprep.subr.bf16.mxu1 %v4625_v11 }
 0x1fa   :  { %4054 = vmatprep.subr.bf16.mxu0 %v4534_v13  ;;  %v4595_v13 = vld [vmem:[%s6060_s2 + $0xf0] ss:$8 sps:$4 sm:$0xff]   ;;  %1498 = vmatpush2.bf16.msra.mxu1 %v4623_v12 }
 0x1fd   :  { %4055 = vmatpush3.bf16.msra.mxu0 %v4535_v14  ;;  %v4628_v14 = vld [vmem:[%s6057_s3 + $0x2d4] ss:$8 sps:$4 sm:$0xff]  }
 0x1fe   :  { %4056 = vmatprep.subr.bf16.mxu0 %v4536_v15  ;;  %v4626_v15 = vld [vmem:[%s6057_s3 + $0x2d0] ss:$8 sps:$4 sm:$0xff]   ;;  %1499 = vmatprep.subr.bf16.mxu1 %v4628_v14  ;;  %v3471_v14 = vld [vmem:[%s6059_s4 + $0x2] sm:$0x3] }
 0x1ff   :  { %1500 = vmatpush2.bf16.msra.mxu1 %v4626_v15 }
 0x201   :  { %4057 = vmatpush3.bf16.msra.mxu0 %v4537_v16  ;;  %v4631_v16 = vld [vmem:[%s6057_s3 + $0x2c4] ss:$8 sps:$4 sm:$0xff]  }
 0x202   :  { %4058 = vmatprep.subr.bf16.mxu0 %v4538_v17  ;;  %v4629_v17 = vld [vmem:[%s6057_s3 + $0x2c0] ss:$8 sps:$4 sm:$0xff]   ;;  %1501 = vmatprep.subr.bf16.mxu1 %v4631_v16 }
 0x203   :  { %1502 = vmatpush2.bf16.msra.mxu1 %v4629_v17 }
 0x205   :  { %4059 = vmatpush3.bf16.msra.mxu0 %v4539_v18  ;;  %v4634_v18 = vld [vmem:[%s6057_s3 + $0x2b4] ss:$8 sps:$4 sm:$0xff]  }
 0x206   :  { %4060 = vmatprep.subr.bf16.mxu0 %v4540_v19  ;;  %v4632_v19 = vld [vmem:[%s6057_s3 + $0x2b0] ss:$8 sps:$4 sm:$0xff]   ;;  %1503 = vmatprep.subr.bf16.mxu1 %v4634_v18 }
 0x207   :  { %1504 = vmatpush2.bf16.msra.mxu1 %v4632_v19 }
 0x209   :  { %4061 = vmatpush3.bf16.msra.mxu0 %v4541_v20  ;;  %v4637_v20 = vld [vmem:[%s6057_s3 + $0x2a4] ss:$8 sps:$4 sm:$0xff]  }
 0x20a   :  { %4062 = vmatprep.subr.bf16.mxu0 %v4542_v21  ;;  %v4635_v21 = vld [vmem:[%s6057_s3 + $0x2a0] ss:$8 sps:$4 sm:$0xff]   ;;  %1505 = vmatprep.subr.bf16.mxu1 %v4637_v20 }
 0x20b   :  { %1506 = vmatpush2.bf16.msra.mxu1 %v4635_v21 }
 0x20d   :  { %4063 = vmatpush3.bf16.msra.mxu0 %v4543_v22  ;;  %v4640_v22 = vld [vmem:[%s6057_s3 + $0x294] ss:$8 sps:$4 sm:$0xff]  }
 0x20e   :  { %4064 = vmatprep.subr.bf16.mxu0 %v4544_v23  ;;  %v4638_v23 = vld [vmem:[%s6057_s3 + $0x290] ss:$8 sps:$4 sm:$0xff]   ;;  %1507 = vmatprep.subr.bf16.mxu1 %v4640_v22 }
 0x20f   :  { %1508 = vmatpush2.bf16.msra.mxu1 %v4638_v23 }
 0x211   :  { %4065 = vmatpush3.bf16.msra.mxu0 %v4545_v24  ;;  %v4643_v24 = vld [vmem:[%s6057_s3 + $0x284] ss:$8 sps:$4 sm:$0xff]  }
 0x212   :  { %4066 = vmatprep.subr.bf16.mxu0 %v4546_v25  ;;  %v4641_v25 = vld [vmem:[%s6057_s3 + $0x280] ss:$8 sps:$4 sm:$0xff]   ;;  %1509 = vmatprep.subr.bf16.mxu1 %v4643_v24 }
 0x213   :  { %1510 = vmatpush2.bf16.msra.mxu1 %v4641_v25 }
 0x215   :  { %4067 = vmatpush3.bf16.msra.mxu0 %v4547_v26 }
 0x218   :  { %1001 = vmatmul.mubr.bf16.vlgmr.msra.gmra.mxu0 %v4548_v27 }
 0x219   :  { %1008 = vmatprep.mubr.bf16.mxu0 %v4551_v28 }
 0x220   :  { %1009 = vmatmul.mubr.bf16.gmra.mxu0 %v4553_v29 }
 0x221   :  { %1016 = vmatprep.mubr.bf16.mxu0 %v4554_v30 }
 0x228   :  { %1017 = vmatmul.mubr.bf16.gmra.mxu0 %v4556_v31 }
 0x229   :  { %1024 = vmatprep.mubr.bf16.mxu0 %v4557_v33 }
 0x230   :  { %1025 = vmatmul.mubr.bf16.gmra.mxu0 %v4559_v34 }
 0x231   :  { %1032 = vmatprep.mubr.bf16.mxu0 %v4560_v35 }
 0x238   :  { %1033 = vmatmul.mubr.bf16.gmra.mxu0 %v4562_v32 }
 0x239   :  { %1040 = vmatprep.mubr.bf16.mxu0 %v4563_v36 }
 0x240   :  { %1041 = vmatmul.mubr.bf16.gmra.mxu0 %v4565_v37 }
 0x241   :  { %1048 = vmatprep.mubr.bf16.mxu0 %v4566_v38 }
 0x248   :  { %1049 = vmatmul.mubr.bf16.gmra.mxu0 %v4568_v39 }
 0x249   :  { %1056 = vmatprep.mubr.bf16.mxu0 %v4569_v40 }
 0x250   :  { %1057 = vmatmul.mubr.bf16.gmra.mxu0 %v4571_v41 }
 0x251   :  { %1064 = vmatprep.mubr.bf16.mxu0 %v4572_v42 }
 0x258   :  { %1065 = vmatmul.mubr.bf16.gmra.mxu0 %v4574_v43 }
 0x259   :  { %1072 = vmatprep.mubr.bf16.mxu0 %v4575_v44 }
 0x260   :  { %1073 = vmatmul.mubr.bf16.gmra.mxu0 %v4577_v45 }
 0x261   :  { %1080 = vmatprep.mubr.bf16.mxu0 %v4578_v46 }
 0x268   :  { %1081 = vmatmul.mubr.bf16.gmra.mxu0 %v4580_v47 }
 0x269   :  { %1088 = vmatprep.mubr.bf16.mxu0 %v4581_v48 }
 0x270   :  { %1089 = vmatmul.mubr.bf16.gmra.mxu0 %v4583_v53 }
 0x271   :  { %1096 = vmatprep.mubr.bf16.mxu0 %v4584_v54 }
 0x278   :  { %1097 = vmatmul.mubr.bf16.gmra.mxu0 %v4586_v59 }
 0x279   :  { %1104 = vmatprep.mubr.bf16.mxu0 %v4587_v60 }
 0x280   :  { %1105 = vmatmul.mubr.bf16.gmra.mxu0 %v4589_v1 }
 0x281   :  { %1112 = vmatprep.mubr.bf16.mxu0 %v4590_v2 }
 0x288   :  { %1113 = vmatmul.mubr.bf16.gmra.mxu0 %v4592_v7  ;;  %v5113_v7 = vshrl.u32 %v1196_v3, 7 }
 0x289   :  { %1120 = vmatprep.mubr.bf16.mxu0 %v4593_v8 }
 0x28a   :  { %v6079_v11 = vsub.s32 1, %v5113_v7  ;;  %v5119_v12 = vsub.s32 0, %v5113_v7 }
 0x28c   :  { %6096 = vst [vmem:[#allocation5_spill] sm:$0xff] %v5119_v12  ;;  %v5126_v18 = vrot.slane %v3471_v14, %v6079_v11  ;;  %v5129_v19 = vrot.slane %v3471_v14, %v5119_v12 }
 0x290   :  { %1121 = vmatmul.mubr.bf16.gmra.mxu0 %v4595_v13 }
 0x2d8   :  { %v4068_v26 = vpop.f32.mrf.mxu0 }
 0x2da   :  { %v4069_v27 = vpop.f32.mrf.mxu0 }
 0x2db   :  { %v4070_v28 = vadd.f32 %v4069_v27, %v4068_v26 }
 0x2dc   :  { %v4071_v29 = vpop.f32.mrf.mxu0 }
 0x2dd   :  { %v5138_v25 = vadd.f32 %v4070_v28, %v5129_v19 }
 0x2de   :  { %v4072_v30 = vpop.f32.mrf.mxu0 }
 0x2df   :  { %v4073_v15 = vadd.f32 %v4072_v30, %v4071_v29 }
 0x2e0   :  { %v4074_v31 = vpop.f32.mrf.mxu0 }
 0x2e1   :  { %v5132_v21 = vadd.f32 %v4073_v15, %v5129_v19 }
 0x2e2   :  { %v4075_v33 = vpop.f32.mrf.mxu0 }
 0x2e3   :  { %v5087_v34 = vadd.f32 %v4075_v33, %v4074_v31  ;;  %v1240_v29 = vmax.f32 %v5132_v21, 0.0 }
 0x2e4   :  { %v4077_v35 = vpop.f32.mrf.mxu0 }
 0x2e6   :  { %v4078_v32 = vpop.f32.mrf.mxu0 }
 0x2e7   :  { %v5089_v36 = vadd.f32 %v4078_v32, %v4077_v35  ;;  %v1238_v32 = vmax.f32 %v5138_v25, 0.0 }
 0x2e8   :  { %v4080_v37 = vpop.f32.mrf.mxu0 }
 0x2ea   :  { %v4081_v38 = vpop.f32.mrf.mxu0 }
 0x2eb   :  { %v5091_v39 = vadd.f32 %v4081_v38, %v4080_v37  ;;  %v1270_v38 = vpack.c.bf16 %v1240_v29, %v1238_v32 }
 0x2ec   :  { %v4083_v40 = vpop.f32.mrf.mxu0 }
 0x2ed   :  { %v5190_v3 = vadd.f32 %v5091_v39, %v5129_v19 }
 0x2ee   :  { %v4084_v41 = vpop.f32.mrf.mxu0 }
 0x2ef   :  { %v5093_v42 = vadd.f32 %v4084_v41, %v4083_v40  ;;  %v5157_v40 = vadd.f32 %v5089_v36, %v5129_v19  ;;  %v1246_v15 = vmax.f32 %v5190_v3, 0.0 }
 0x2f0   :  { %v4086_v43 = vpop.f32.mrf.mxu0 }
 0x2f2   :  { %v4087_v44 = vpop.f32.mrf.mxu0 }
 0x2f3   :  { %v5095_v45 = vadd.f32 %v4087_v44, %v4086_v43 }
 0x2f4   :  { %v4089_v46 = vpop.f32.mrf.mxu0 }
 0x2f6   :  { %v4090_v47 = vpop.f32.mrf.mxu0 }
 0x2f7   :  { %v5097_v48 = vadd.f32 %v4090_v47, %v4089_v46  ;;  %v5164_v46 = vadd.f32 %v5087_v34, %v5129_v19 }
 0x2f8   :  { %v4092_v49 = vpop.f32.mrf.mxu0 }
 0x2fa   :  { %v4093_v50 = vpop.f32.mrf.mxu0 }
 0x2fb   :  { %v5099_v51 = vadd.f32 %v4093_v50, %v4092_v49  ;;  %v1244_v50 = vmax.f32 %v5157_v40, 0.0 }
 0x2fc   :  { %v4095_v52 = vpop.f32.mrf.mxu0 }
 0x2fe   :  { %v4096_v53 = vpop.f32.mrf.mxu0 }
 0x2ff   :  { %v5101_v54 = vadd.f32 %v4096_v53, %v4095_v52 }
 0x300   :  { %v4098_v55 = vpop.f32.mrf.mxu0 }
 0x302   :  { %v4099_v56 = vpop.f32.mrf.mxu0 }
 0x303   :  { %v5103_v57 = vadd.f32 %v4099_v56, %v4098_v55  ;;  %v1242_v56 = vmax.f32 %v5164_v46, 0.0 }
 0x304   :  { %v4101_v58 = vpop.f32.mrf.mxu0 }
 0x306   :  { %v4102_v59 = vpop.f32.mrf.mxu0 }
 0x307   :  { %v5105_v60 = vadd.f32 %v4102_v59, %v4101_v58  ;;  %v5179_v59 = vadd.f32 %v5093_v42, %v5129_v19 }
 0x308   :  { %v4104_v61 = vpop.f32.mrf.mxu0 }
 0x30a   :  { %v4105_v62 = vpop.f32.mrf.mxu0 }
 0x30b   :  { %v5107_v63 = vadd.f32 %v4105_v62, %v4104_v61  ;;  %v1272_v62 = vpack.c.bf16 %v1244_v50, %v1242_v56 }
 0x30c   :  { %v4107_v0 = vpop.f32.mrf.mxu0 }
 0x30e   :  { %v4108_v1 = vpop.f32.mrf.mxu0 }
 0x30f   :  { %v5109_v2 = vadd.f32 %v4108_v1, %v4107_v0 }
 0x310   :  { %v4110_v4 = vpop.f32.mrf.mxu0 }
 0x312   :  { %v4111_v5 = vpop.f32.mrf.mxu0 }
 0x313   :  { %v5111_v6 = vadd.f32 %v4111_v5, %v4110_v4  ;;  %v1248_v5 = vmax.f32 %v5179_v59, 0.0  ;;  %v2384_v59 = vadd.s32 64, %v5113_v7 }
 0x314   :  { %v4113_v8 = vpop.f32.mrf.mxu0 }
 0x316   :  { %v4114_v9 = vpop.f32.mrf.mxu0 }
 0x317   :  { %v5115_v10 = vadd.f32 %v4114_v9, %v4113_v8 }
 0x318   :  { %v4116_v13 = vpop.f32.mrf.mxu0 }
 0x31a   :  { %v4117_v16 = vpop.f32.mrf.mxu0 }
 0x31b   :  { %v4118_v17 = vadd.f32 %v4117_v16, %v4116_v13 }
 0x31c   :  { %v4119_v20 = vpop.f32.mrf.mxu0 }
 0x31d   :  { %v5135_v23 = vadd.f32 %v4118_v17, %v5126_v18  ;;  %v5205_v17 = vadd.f32 %v5097_v48, %v5129_v19 }
 0x31e   :  { %v4120_v22 = vpop.f32.mrf.mxu0 }
 0x31f   :  { %v4121_v24 = vadd.f32 %v4120_v22, %v4119_v20  ;;  %v6067_v31 = vmax.f32 %v5135_v23, 0.0  ;;  %v1274_v22 = vpack.c.bf16 %v1248_v5, %v1246_v15 }
 0x320   :  { %v4122_v26 = vpop.f32.mrf.mxu0 }
 0x321   :  { %v5141_v27 = vadd.f32 %v4121_v24, %v5126_v18 }
 0x322   :  { %v4123_v30 = vpop.f32.mrf.mxu0 }
 0x323   :  { %v6070_v33 = vmax.f32 %v5141_v27, 0.0  ;;  %v4124_v35 = vadd.f32 %v4123_v30, %v4122_v26  ;;  %v5216_v30 = vadd.f32 %v5095_v45, %v5129_v19 }
 0x324   :  { %v4125_v37 = vpop.f32.mrf.mxu0 }
 0x325   :  { %v1271_v28 = vpack.c.bf16 %v6070_v33, %v6067_v31  ;;  %v5160_v43 = vadd.f32 %v4124_v35, %v5126_v18  ;;  %v5320_v33 = vadd.f32 %v5111_v6, %v5129_v19 }
 0x326   :  { %v4126_v41 = vpop.f32.mrf.mxu0 }
 0x327   :  { %v4127_v44 = vadd.f32 %v4126_v41, %v4125_v37  ;;  %1511 = vmatprep.mubr.bf16.mxu1 %v1271_v28  ;;  %v6078_v36 = vmax.f32 %v5160_v43, 0.0  ;;  %v1252_v37 = vmax.f32 %v5205_v17, 0.0  ;;  %v2386_v17 = vadd.s32 80, %v5113_v7 }
 0x328   :  { %v4128_v47 = vpop.f32.mrf.mxu0  ;;  %1512 = vmatmul.mubr.bf16.vlgmr.msra.gmra.mxu1 %v1270_v38 }
 0x329   :  { %v5167_v49 = vadd.f32 %v4127_v44, %v5126_v18 }
 0x32a   :  { %v4129_v52 = vpop.f32.mrf.mxu0 }
 0x32b   :  { %v6077_v53 = vmax.f32 %v5167_v49, 0.0  ;;  %v4130_v55 = vadd.f32 %v4129_v52, %v4128_v47  ;;  %v1250_v47 = vmax.f32 %v5216_v30, 0.0 }
 0x32c   :  { %v4131_v58 = vpop.f32.mrf.mxu0 }
 0x32d   :  { %v1273_v34 = vpack.c.bf16 %v6077_v53, %v6078_v36  ;;  %v5186_v0 = vadd.f32 %v4130_v55, %v5126_v18  ;;  %v5231_v55 = vadd.f32 %v5101_v54, %v5129_v19 }
 0x32e   :  { %v4132_v61 = vpop.f32.mrf.mxu0 }
 0x32f   :  { %v4133_v1 = vadd.f32 %v4132_v61, %v4131_v58  ;;  %1521 = vmatprep.mubr.bf16.mxu1 %v1273_v34  ;;  %v6074_v9 = vmax.f32 %v5186_v0, 0.0  ;;  %v1276_v34 = vpack.c.bf16 %v1252_v37, %v1250_v47 }
 0x330   :  { %v4134_v4 = vpop.f32.mrf.mxu0  ;;  %1522 = vmatmul.mubr.bf16.gmra.mxu1 %v1272_v62 }
 0x331   :  { %v5193_v42 = vadd.f32 %v4133_v1, %v5126_v18  ;;  %v5242_v1 = vadd.f32 %v5099_v51, %v5129_v19 }
 0x332   :  { %v4135_v8 = vpop.f32.mrf.mxu0 }
 0x333   :  { %v6073_v13 = vmax.f32 %v5193_v42, 0.0  ;;  %v4136_v14 = vadd.f32 %v4135_v8, %v4134_v4  ;;  %v6086_v8 = vmax.f32 %v5231_v55, 0.0 }
 0x334   :  { %v4137_v16 = vpop.f32.mrf.mxu0 }
 0x335   :  { %v1275_v39 = vpack.c.bf16 %v6073_v13, %v6074_v9  ;;  %v5212_v24 = vadd.f32 %v4136_v14, %v5126_v18  ;;  %v6081_v9 = vmax.f32 %v5320_v33, 0.0 }
 0x336   :  { %v4138_v20 = vpop.f32.mrf.mxu0 }
 0x337   :  { %v4139_v26 = vadd.f32 %v4138_v20, %v4137_v16  ;;  %1531 = vmatprep.mubr.bf16.mxu1 %v1275_v39  ;;  %v6069_v38 = vmax.f32 %v5212_v24, 0.0 }
 0x338   :  { %v4140_v35 = vpop.f32.mrf.mxu0  ;;  %1532 = vmatmul.mubr.bf16.gmra.mxu1 %v1274_v22  ;;  %v6087_v22 = vmax.f32 %v5242_v1, 0.0 }
 0x339   :  { %v5219_v48 = vadd.f32 %v4139_v26, %v5126_v18 }
 0x33a   :  { %v4141_v28 = vpop.f32.mrf.mxu0 }
 0x33b   :  { %v6068_v41 = vmax.f32 %v5219_v48, 0.0  ;;  %v4142_v44 = vadd.f32 %v4141_v28, %v4140_v35  ;;  %v5257_v35 = vadd.f32 %v5105_v60, %v5129_v19 }
 0x33c   :  { %v4143_v52 = vpop.f32.mrf.mxu0 }
 0x33d   :  { %v1277_v45 = vpack.c.bf16 %v6068_v41, %v6069_v38  ;;  %v5238_v61 = vadd.f32 %v4142_v44, %v5126_v18  ;;  %v1278_v44 = vpack.c.bf16 %v6086_v8, %v6087_v22 }
 0x33e   :  { %v4144_v58 = vpop.f32.mrf.mxu0 }
 0x33f   :  { %v4145_v62 = vadd.f32 %v4144_v58, %v4143_v52  ;;  %1541 = vmatprep.mubr.bf16.mxu1 %v1277_v45  ;;  %v6064_v16 = vmax.f32 %v5238_v61, 0.0  ;;  %v5268_v58 = vadd.f32 %v5103_v57, %v5129_v19 }
 0x340   :  { %v4146_v4 = vpop.f32.mrf.mxu0  ;;  %1542 = vmatmul.mubr.bf16.gmra.mxu1 %v1276_v34 }
 0x341   :  { %v5245_v54 = vadd.f32 %v4145_v62, %v5126_v18  ;;  %v6084_v62 = vmax.f32 %v5257_v35, 0.0 }
 0x342   :  { %v4147_v14 = vpop.f32.mrf.mxu0 }
 0x343   :  { %v6063_v39 = vmax.f32 %v5245_v54, 0.0  ;;  %v4148_v20 = vadd.f32 %v4147_v14, %v4146_v4 }
 0x344   :  { %v4149_v26 = vpop.f32.mrf.mxu0 }
 0x345   :  { %v1279_v51 = vpack.c.bf16 %v6063_v39, %v6064_v16  ;;  %v5264_v52 = vadd.f32 %v4148_v20, %v5126_v18  ;;  %v5294_v16 = vadd.f32 %v5107_v63, %v5129_v19 }
 0x346   :  { %v4150_v28 = vpop.f32.mrf.mxu0 }
 0x347   :  { %v4151_v45 = vadd.f32 %v4150_v28, %v4149_v26  ;;  %1551 = vmatprep.mubr.bf16.mxu1 %v1279_v51  ;;  %v6066_v14 = vmax.f32 %v5264_v52, 0.0  ;;  %v6085_v26 = vmax.f32 %v5268_v58, 0.0  ;;  %v5283_v28 = vadd.f32 %v5109_v2, %v5129_v19 }
 0x348   :  { %v4152_v34 = vpop.f32.mrf.mxu0  ;;  %1552 = vmatmul.mubr.bf16.gmra.mxu1 %v1278_v44 }
 0x349   :  { %v5271_v60 = vadd.f32 %v4151_v45, %v5126_v18  ;;  %v1280_v45 = vpack.c.bf16 %v6084_v62, %v6085_v26 }
 0x34a   :  { %v4153_v4 = vpop.f32.mrf.mxu0 }
 0x34b   :  { %v6065_v39 = vmax.f32 %v5271_v60, 0.0  ;;  %v4154_v20 = vadd.f32 %v4153_v4, %v4152_v34 }
 0x34c   :  { %v4155_v51 = vpop.f32.mrf.mxu0 }
 0x34d   :  { %v1281_v57 = vpack.c.bf16 %v6065_v39, %v6066_v14  ;;  %v5290_v34 = vadd.f32 %v4154_v20, %v5126_v18  ;;  %v6082_v14 = vmax.f32 %v5283_v28, 0.0 }
 0x34e   :  { %v4156_v44 = vpop.f32.mrf.mxu0 }
 0x34f   :  { %v4157_v4 = vadd.f32 %v4156_v44, %v4155_v51  ;;  %1561 = vmatprep.mubr.bf16.mxu1 %v1281_v57  ;;  %v6072_v41 = vmax.f32 %v5290_v34, 0.0  ;;  %v6083_v51 = vmax.f32 %v5294_v16, 0.0  ;;  %v5309_v44 = vadd.f32 %v5115_v10, %v5129_v19 }
 0x350   :  { %v4158_v39 = vpop.f32.mrf.mxu0  ;;  %1562 = vmatmul.mubr.bf16.gmra.mxu1 %v1280_v45 }
 0x351   :  { %v5297_v2 = vadd.f32 %v4157_v4, %v5126_v18  ;;  %v1282_v4 = vpack.c.bf16 %v6082_v14, %v6083_v51  ;;  %v6080_v10 = vmax.f32 %v5309_v44, 0.0 }
 0x352   :  { %v4159_v31 = vpop.f32.mrf.mxu0 }
 0x353   :  { %v6071_v38 = vmax.f32 %v5297_v2, 0.0  ;;  %v4160_v20 = vadd.f32 %v4159_v31, %v4158_v39  ;;  %v1284_v6 = vpack.c.bf16 %v6080_v10, %v6081_v9 }
 0x354   :  { %v4161_v57 = vpop.f32.mrf.mxu0 }
 0x355   :  { %v1283_v63 = vpack.c.bf16 %v6071_v38, %v6072_v41  ;;  %v5316_v31 = vadd.f32 %v4160_v20, %v5126_v18 }
 0x356   :  { %v4162_v45 = vpop.f32.mrf.mxu0 }
 0x357   :  { %v4163_v39 = vadd.f32 %v4162_v45, %v4161_v57  ;;  %1571 = vmatprep.mubr.bf16.mxu1 %v1283_v63  ;;  %v6076_v41 = vmax.f32 %v5316_v31, 0.0 }
 0x358   :  { %1572 = vmatmul.mubr.bf16.gmra.mxu1 %v1282_v4 }
 0x359   :  { %v5323_v38 = vadd.f32 %v4163_v39, %v5126_v18  ;;  %v4662_v18 = vld [vmem:[%s6060_s2 + $0x4] ss:$8 sps:$4 sm:$0xff]  }
 0x35b   :  { %v6075_v13 = vmax.f32 %v5323_v38, 0.0 }
 0x35d   :  { %v1285_v20 = vpack.c.bf16 %v6075_v13, %v6076_v41 }
 0x35f   :  { %1581 = vmatprep.mubr.bf16.mxu1 %v1285_v20 }
 0x360   :  { %1582 = vmatmul.mubr.bf16.gmra.mxu1 %v1284_v6 }
 0x361   :  { %2104 = vmatprep.mubr.bf16.mxu1 %v4662_v18 }
 0x3e8   :  { %v1513_v19 = vpop.f32.mrf.mxu1 }
 0x3ea   :  { %v1515_v57 = vpop.f32.mrf.mxu1 }
 0x3ec   :  { %v1517_v63 = vpop.f32.mrf.mxu1 }
 0x3ed   :  { %v3929_v45 = vpack.c.bf16 %v1517_v63, %v1513_v19 }
 0x3ee   :  { %v1519_v4 = vpop.f32.mrf.mxu1 }
 0x3ef   :  { %3930 = vst [vmem:[#allocation2] sm:$0xff] %v3929_v45   ;;  %v3969_v39 = vpack.c.bf16 %v1519_v4, %v1515_v57 }
 0x3f0   :  { %v1523_v13 = vpop.f32.mrf.mxu1 }
 0x3f1   :  { %4028 = vst [vmem:[#allocation2 + $0x40] sm:$0xff] %v3969_v39  }
 0x3f2   :  { %v1525_v41 = vpop.f32.mrf.mxu1 }
 0x3f4   :  { %v1527_v53 = vpop.f32.mrf.mxu1 }
 0x3f5   :  { %v3934_v36 = vpack.c.bf16 %v1527_v53, %v1523_v13 }
 0x3f6   :  { %v1529_v11 = vpop.f32.mrf.mxu1 }
 0x3f7   :  { %4021 = vst [vmem:[#allocation2 + $0x8] sm:$0xff] %v3934_v36   ;;  %v3974_v20 = vpack.c.bf16 %v1529_v11, %v1525_v41 }
 0x3f8   :  { %v1533_v6 = vpop.f32.mrf.mxu1 }
 0x3f9   :  { %4029 = vst [vmem:[#allocation2 + $0x48] sm:$0xff] %v3974_v20  }
 0x3fa   :  { %v1535_v10 = vpop.f32.mrf.mxu1 }
 0x3fc   :  { %v1537_v9 = vpop.f32.mrf.mxu1 }
 0x3fd   :  { %v3939_v18 = vpack.c.bf16 %v1537_v9, %v1533_v6 }
 0x3fe   :  { %v1539_v14 = vpop.f32.mrf.mxu1 }
 0x3ff   :  { %4022 = vst [vmem:[#allocation2 + $0x10] sm:$0xff] %v3939_v18   ;;  %v3979_v51 = vpack.c.bf16 %v1539_v14, %v1535_v10 }
 0x400   :  { %v1543_v19 = vpop.f32.mrf.mxu1 }
 0x401   :  { %4030 = vst [vmem:[#allocation2 + $0x50] sm:$0xff] %v3979_v51  }
 0x402   :  { %v1545_v63 = vpop.f32.mrf.mxu1 }
 0x404   :  { %v1547_v57 = vpop.f32.mrf.mxu1 }
 0x405   :  { %v3944_v45 = vpack.c.bf16 %v1547_v57, %v1543_v19 }
 0x406   :  { %v1549_v4 = vpop.f32.mrf.mxu1 }
 0x407   :  { %4023 = vst [vmem:[#allocation2 + $0x18] sm:$0xff] %v3944_v45   ;;  %v3984_v39 = vpack.c.bf16 %v1549_v4, %v1545_v63 }
 0x408   :  { %v1553_v53 = vpop.f32.mrf.mxu1 }
 0x409   :  { %4031 = vst [vmem:[#allocation2 + $0x58] sm:$0xff] %v3984_v39  }
 0x40a   :  { %v1555_v36 = vpop.f32.mrf.mxu1 }
 0x40c   :  { %v1557_v11 = vpop.f32.mrf.mxu1 }
 0x40d   :  { %v3949_v13 = vpack.c.bf16 %v1557_v11, %v1553_v53 }
 0x40e   :  { %v1559_v41 = vpop.f32.mrf.mxu1 }
 0x40f   :  { %4024 = vst [vmem:[#allocation2 + $0x20] sm:$0xff] %v3949_v13   ;;  %v3989_v20 = vpack.c.bf16 %v1559_v41, %v1555_v36 }
 0x410   :  { %v1563_v9 = vpop.f32.mrf.mxu1 }
 0x411   :  { %4032 = vst [vmem:[#allocation2 + $0x60] sm:$0xff] %v3989_v20  }
 0x412   :  { %v1565_v6 = vpop.f32.mrf.mxu1 }
 0x414   :  { %v1567_v14 = vpop.f32.mrf.mxu1 }
 0x415   :  { %v3954_v10 = vpack.c.bf16 %v1567_v14, %v1563_v9 }
 0x416   :  { %v1569_v51 = vpop.f32.mrf.mxu1 }
 0x417   :  { %4025 = vst [vmem:[#allocation2 + $0x28] sm:$0xff] %v3954_v10   ;;  %v3994_v18 = vpack.c.bf16 %v1569_v51, %v1565_v6 }
 0x418   :  { %v1573_v19 = vpop.f32.mrf.mxu1 }
 0x419   :  { %4033 = vst [vmem:[#allocation2 + $0x68] sm:$0xff] %v3994_v18  }
 0x41a   :  { %v1575_v57 = vpop.f32.mrf.mxu1 }
 0x41c   :  { %v1577_v63 = vpop.f32.mrf.mxu1 }
 0x41d   :  { %v3959_v45 = vpack.c.bf16 %v1577_v63, %v1573_v19  ;;  %v4650_v19 = vld [vmem:[#allocation2 + $0x60] sm:$0xff]   ;;  %v4652_v63 = vld [vmem:[#allocation2 + $0x58] sm:$0xff]  }
 0x41e   :  { %v1579_v4 = vpop.f32.mrf.mxu1  ;;  %v4649_v18 = vld [vmem:[#allocation2 + $0x28] sm:$0xff]  }
 0x41f   :  { %4026 = vst [vmem:[#allocation2 + $0x30] sm:$0xff] %v3959_v45   ;;  %v3999_v39 = vpack.c.bf16 %v1579_v4, %v1575_v57  ;;  %v4651_v57 = vld [vmem:[#allocation2 + $0x20] sm:$0xff]   ;;  %v4653_v45 = vld [vmem:[#allocation2 + $0x18] sm:$0xff]   ;;  %v4654_v4 = vld [vmem:[#allocation2 + $0x50] sm:$0xff]  }
 0x420   :  { %v1583_v53 = vpop.f32.mrf.mxu1  ;;  %v4648_v51 = vld [vmem:[#allocation2 + $0x68] sm:$0xff]  }
 0x421   :  { %4034 = vst [vmem:[#allocation2 + $0x70] sm:$0xff] %v3999_v39   ;;  %v4655_v39 = vld [vmem:[#allocation2 + $0x10] sm:$0xff]  }
 0x422   :  { %v1585_v11 = vpop.f32.mrf.mxu1 }
 0x424   :  { %v1587_v36 = vpop.f32.mrf.mxu1 }
 0x425   :  { %v3964_v13 = vpack.c.bf16 %v1587_v36, %v1583_v53  ;;  %v4656_v53 = vld [vmem:[#allocation2 + $0x48] sm:$0xff]   ;;  %v4658_v36 = vld [vmem:[#allocation2 + $0x40] sm:$0xff]  }
 0x426   :  { %v1589_v41 = vpop.f32.mrf.mxu1  ;;  %v4647_v10 = vld [vmem:[#allocation2 + $0x30] sm:$0xff]  }
 0x427   :  { %4027 = vst [vmem:[#allocation2 + $0x38] sm:$0xff] %v3964_v13   ;;  %v4004_v20 = vpack.c.bf16 %v1589_v41, %v1585_v11  ;;  %v4657_v11 = vld [vmem:[#allocation2 + $0x8] sm:$0xff]   ;;  %v4659_v13 = vld [vmem:[#allocation2] sm:$0xff]  }
 0x428   :  { %v4646_v6 = vld [vmem:[#allocation2 + $0x70] sm:$0xff]   ;;  %v4660_v41 = vld [vmem:[%s6060_s2] ss:$8 sps:$4 sm:$0xff]  }
 0x429   :  { %4035 = vst [vmem:[#allocation2 + $0x78] sm:$0xff] %v4004_v20   ;;  %v4663_v20 = vld [vmem:[%s6060_s2 + $0x14] ss:$8 sps:$4 sm:$0xff]  }
 0x42e   :  { %v4645_v14 = vld [vmem:[#allocation2 + $0x38] sm:$0xff]  }
 0x430   :  { %v4644_v9 = vld [vmem:[#allocation2 + $0x78] sm:$0xff]  }
 0x431   :  { %4164 = vmatprep.subr.bf16.mxu1 %v4644_v9  ;;  %v4665_v9 = vld [vmem:[%s6060_s2 + $0x10] ss:$8 sps:$4 sm:$0xff]  }
 0x432   :  { %4165 = vmatpush3.bf16.msra.mxu1 %v4645_v14  ;;  %v4666_v14 = vld [vmem:[%s6060_s2 + $0x24] ss:$8 sps:$4 sm:$0xff]  }
 0x433   :  { %4166 = vmatprep.subr.bf16.mxu1 %v4646_v6  ;;  %v4668_v6 = vld [vmem:[%s6060_s2 + $0x20] ss:$8 sps:$4 sm:$0xff]  }
 0x436   :  { %4167 = vmatpush3.bf16.msra.mxu1 %v4647_v10  ;;  %v4669_v10 = vld [vmem:[%s6060_s2 + $0x34] ss:$8 sps:$4 sm:$0xff]  }
 0x437   :  { %4168 = vmatprep.subr.bf16.mxu1 %v4648_v51  ;;  %v4671_v51 = vld [vmem:[%s6060_s2 + $0x30] ss:$8 sps:$4 sm:$0xff]  }
 0x43a   :  { %4169 = vmatpush3.bf16.msra.mxu1 %v4649_v18  ;;  %v4672_v18 = vld [vmem:[%s6060_s2 + $0x44] ss:$8 sps:$4 sm:$0xff]  }
 0x43b   :  { %4170 = vmatprep.subr.bf16.mxu1 %v4650_v19  ;;  %v4674_v19 = vld [vmem:[%s6060_s2 + $0x40] ss:$8 sps:$4 sm:$0xff]  }
 0x43e   :  { %4171 = vmatpush3.bf16.msra.mxu1 %v4651_v57  ;;  %v4675_v57 = vld [vmem:[%s6060_s2 + $0x54] ss:$8 sps:$4 sm:$0xff]  }
 0x43f   :  { %4172 = vmatprep.subr.bf16.mxu1 %v4652_v63  ;;  %v4677_v63 = vld [vmem:[%s6060_s2 + $0x50] ss:$8 sps:$4 sm:$0xff]  }
 0x442   :  { %4173 = vmatpush3.bf16.msra.mxu1 %v4653_v45  ;;  %v4678_v45 = vld [vmem:[%s6060_s2 + $0x64] ss:$8 sps:$4 sm:$0xff]  }
 0x443   :  { %4174 = vmatprep.subr.bf16.mxu1 %v4654_v4  ;;  %v4680_v4 = vld [vmem:[%s6060_s2 + $0x60] ss:$8 sps:$4 sm:$0xff]  }
 0x446   :  { %4175 = vmatpush3.bf16.msra.mxu1 %v4655_v39  ;;  %v4681_v39 = vld [vmem:[%s6060_s2 + $0x74] ss:$8 sps:$4 sm:$0xff]  }
 0x447   :  { %4176 = vmatprep.subr.bf16.mxu1 %v4656_v53  ;;  %v4683_v53 = vld [vmem:[%s6060_s2 + $0x70] ss:$8 sps:$4 sm:$0xff]  }
 0x44a   :  { %4177 = vmatpush3.bf16.msra.mxu1 %v4657_v11  ;;  %v4684_v11 = vld [vmem:[%s6060_s2 + $0x84] ss:$8 sps:$4 sm:$0xff]  }
 0x44b   :  { %4178 = vmatprep.subr.bf16.mxu1 %v4658_v36  ;;  %v4686_v36 = vld [vmem:[%s6060_s2 + $0x80] ss:$8 sps:$4 sm:$0xff]  }
 0x44e   :  { %4179 = vmatpush3.bf16.msra.mxu1 %v4659_v13  ;;  %v4687_v13 = vld [vmem:[%s6060_s2 + $0x94] ss:$8 sps:$4 sm:$0xff]  }
 0x451   :  { %2105 = vmatmul.mubr.bf16.vlgmr.msra.gmra.mxu1 %v4660_v41  ;;  %v4689_v41 = vld [vmem:[%s6060_s2 + $0x90] ss:$8 sps:$4 sm:$0xff]  }
 0x452   :  { %2112 = vmatprep.mubr.bf16.mxu1 %v4663_v20  ;;  %v4690_v20 = vld [vmem:[%s6060_s2 + $0xa4] ss:$8 sps:$4 sm:$0xff]  }
 0x459   :  { %2113 = vmatmul.mubr.bf16.gmra.mxu1 %v4665_v9  ;;  %v4692_v9 = vld [vmem:[%s6060_s2 + $0xa0] ss:$8 sps:$4 sm:$0xff]  }
 0x45a   :  { %2120 = vmatprep.mubr.bf16.mxu1 %v4666_v14  ;;  %v4693_v14 = vld [vmem:[%s6060_s2 + $0xb4] ss:$8 sps:$4 sm:$0xff]  }
 0x461   :  { %2121 = vmatmul.mubr.bf16.gmra.mxu1 %v4668_v6  ;;  %v4695_v6 = vld [vmem:[%s6060_s2 + $0xb0] ss:$8 sps:$4 sm:$0xff]  }
 0x462   :  { %2128 = vmatprep.mubr.bf16.mxu1 %v4669_v10  ;;  %v4698_v10 = vld [vmem:[%s6060_s2 + $0xc4] ss:$8 sps:$4 sm:$0xff]  }
 0x469   :  { %2129 = vmatmul.mubr.bf16.gmra.mxu1 %v4671_v51  ;;  %v4696_v51 = vld [vmem:[%s6060_s2 + $0xc0] ss:$8 sps:$4 sm:$0xff]  }
 0x46a   :  { %2136 = vmatprep.mubr.bf16.mxu1 %v4672_v18  ;;  %v4701_v18 = vld [vmem:[%s6060_s2 + $0xd4] ss:$8 sps:$4 sm:$0xff]  }
 0x471   :  { %2137 = vmatmul.mubr.bf16.gmra.mxu1 %v4674_v19  ;;  %v4699_v19 = vld [vmem:[%s6060_s2 + $0xd0] ss:$8 sps:$4 sm:$0xff]  }
 0x472   :  { %2144 = vmatprep.mubr.bf16.mxu1 %v4675_v57  ;;  %v4704_v57 = vld [vmem:[%s6060_s2 + $0xe4] ss:$8 sps:$4 sm:$0xff]  }
 0x479   :  { %2145 = vmatmul.mubr.bf16.gmra.mxu1 %v4677_v63  ;;  %v4702_v63 = vld [vmem:[%s6060_s2 + $0xe0] ss:$8 sps:$4 sm:$0xff]  }
 0x47a   :  { %2152 = vmatprep.mubr.bf16.mxu1 %v4678_v45  ;;  %v4707_v45 = vld [vmem:[%s6060_s2 + $0xf4] ss:$8 sps:$4 sm:$0xff]  }
 0x481   :  { %2153 = vmatmul.mubr.bf16.gmra.mxu1 %v4680_v4  ;;  %v4705_v4 = vld [vmem:[%s6060_s2 + $0xf0] ss:$8 sps:$4 sm:$0xff]  }
 0x482   :  { %2160 = vmatprep.mubr.bf16.mxu1 %v4681_v39  ;;  %v4708_v39 = vld [vmem:[%s6057_s3 + $0x4f0] ss:$8 sps:$4 sm:$0xff]  }
 0x483   :  { %4276 = vmatprep.subr.bf16.mxu0 %v4708_v39 }
 0x489   :  { %2161 = vmatmul.mubr.bf16.gmra.mxu1 %v4683_v53  ;;  %v4709_v53 = vld [vmem:[%s6057_s3 + $0x470] ss:$8 sps:$4 sm:$0xff]  }
 0x48a   :  { %2168 = vmatprep.mubr.bf16.mxu1 %v4684_v11  ;;  %4277 = vmatpush3.bf16.msra.mxu0 %v4709_v53  ;;  %v4710_v11 = vld [vmem:[%s6057_s3 + $0x4e0] ss:$8 sps:$4 sm:$0xff]  }
 0x48b   :  { %4278 = vmatprep.subr.bf16.mxu0 %v4710_v11  ;;  %v2378_v11 = vadd.s32 16, %v5113_v7 }
 0x491   :  { %2169 = vmatmul.mubr.bf16.gmra.mxu1 %v4686_v36  ;;  %v4711_v36 = vld [vmem:[%s6057_s3 + $0x460] ss:$8 sps:$4 sm:$0xff]  }
 0x492   :  { %2176 = vmatprep.mubr.bf16.mxu1 %v4687_v13  ;;  %4279 = vmatpush3.bf16.msra.mxu0 %v4711_v36  ;;  %v4712_v13 = vld [vmem:[%s6057_s3 + $0x4d0] ss:$8 sps:$4 sm:$0xff]  }
 0x493   :  { %4280 = vmatprep.subr.bf16.mxu0 %v4712_v13  ;;  %v4718_v13 = vld [vmem:[%s6057_s3 + $0x4a0] ss:$8 sps:$4 sm:$0xff]  }
 0x499   :  { %2177 = vmatmul.mubr.bf16.gmra.mxu1 %v4689_v41  ;;  %v4713_v41 = vld [vmem:[%s6057_s3 + $0x450] ss:$8 sps:$4 sm:$0xff]  }
 0x49a   :  { %2184 = vmatprep.mubr.bf16.mxu1 %v4690_v20  ;;  %4281 = vmatpush3.bf16.msra.mxu0 %v4713_v41  ;;  %v4714_v20 = vld [vmem:[%s6057_s3 + $0x4c0] ss:$8 sps:$4 sm:$0xff]  }
 0x49b   :  { %4282 = vmatprep.subr.bf16.mxu0 %v4714_v20  ;;  %v4719_v41 = vld [vmem:[%s6057_s3 + $0x420] ss:$8 sps:$4 sm:$0xff]   ;;  %v4720_v20 = vld [vmem:[%s6057_s3 + $0x490] ss:$8 sps:$4 sm:$0xff]  }
 0x4a1   :  { %2185 = vmatmul.mubr.bf16.gmra.mxu1 %v4692_v9  ;;  %v4715_v9 = vld [vmem:[%s6057_s3 + $0x440] ss:$8 sps:$4 sm:$0xff]  }
 0x4a2   :  { %2192 = vmatprep.mubr.bf16.mxu1 %v4693_v14  ;;  %4283 = vmatpush3.bf16.msra.mxu0 %v4715_v9  ;;  %v5460_v14 = vld [vmem:[%s6059_s4 + $0x4] sm:$0x3] }
 0x4a9   :  { %2193 = vmatmul.mubr.bf16.gmra.mxu1 %v4695_v6  ;;  %v4716_v6 = vld [vmem:[%s6057_s3 + $0x4b0] ss:$8 sps:$4 sm:$0xff]  }
 0x4aa   :  { %2200 = vmatprep.mubr.bf16.mxu1 %v4698_v10  ;;  %v4717_v10 = vld [vmem:[%s6057_s3 + $0x430] ss:$8 sps:$4 sm:$0xff]   ;;  %4284 = vmatprep.subr.bf16.mxu0 %v4716_v6 }
 0x4ab   :  { %4285 = vmatpush3.bf16.msra.mxu0 %v4717_v10 }
 0x4ac   :  { %4286 = vmatprep.subr.bf16.mxu0 %v4718_v13 }
 0x4af   :  { %4287 = vmatpush3.bf16.msra.mxu0 %v4719_v41 }
 0x4b0   :  { %4288 = vmatprep.subr.bf16.mxu0 %v4720_v20 }
 0x4b1   :  { %2201 = vmatmul.mubr.bf16.gmra.mxu1 %v4696_v51 }
 0x4b2   :  { %2208 = vmatprep.mubr.bf16.mxu1 %v4701_v18  ;;  %v5470_v18 = vrot.slane %v5460_v14, %v5119_v12 }
 0x4b9   :  { %2209 = vmatmul.mubr.bf16.gmra.mxu1 %v4699_v19 }
 0x4ba   :  { %2216 = vmatprep.mubr.bf16.mxu1 %v4704_v57 }
 0x4c1   :  { %2217 = vmatmul.mubr.bf16.gmra.mxu1 %v4702_v63  ;;  %v2377_v63 = vadd.s32 8, %v5113_v7 }
 0x4c2   :  { %2224 = vmatprep.mubr.bf16.mxu1 %v4707_v45  ;;  %v5476_v45 = vstv %s6061_s0 }
 0x4c3   :  { %vm2393_vm0 = vcmp.eq.s32.totalorder %v5113_v7, %v5476_v45  ;;  %vm2394_vm1 = vcmp.eq.s32.totalorder %v2377_v63, %v5476_v45  ;;  %vm2395_vm2 = vcmp.eq.s32.totalorder %v2378_v11, %v5476_v45  ;;  %vm2401_vm8 = vcmp.eq.s32.totalorder %v2384_v59, %v5476_v45 }
 0x4c4   :  { %vm2403_vm10 = vcmp.eq.s32.totalorder %v2386_v17, %v5476_v45 }
 0x4c9   :  { %2225 = vmatmul.mubr.bf16.gmra.mxu1 %v4705_v4 }
 0x511   :  { %v4180_v51 = vpop.f32.mrf.mxu1 }
 0x513   :  { %v4181_v19 = vpop.f32.mrf.mxu1 }
 0x514   :  { %v4182_v57 = vadd.f32 %v4181_v19, %v4180_v51  ;;  %v4757_v51 = vmov 0.0  }
 0x515   :  { %v4183_v4 = vpop.f32.mrf.mxu1  ;;  %v5498_v19 = vsel %vm2393_vm0, 1.0, %v4757_v51  ;;  %v5523_v11 = vsel %vm2395_vm2, 1.0, %v4757_v51 }
 0x516   :  { %v2310_v39 = vadd.f32 %v4182_v57, %v5470_v18  ;;  %v5501_v57 = vsel %vm2394_vm1, 1.0, %v4757_v51 }
 0x517   :  { %v4184_v53 = vpop.f32.mrf.mxu1 }
 0x518   :  { %v4185_v36 = vadd.f32 %v4184_v53, %v4183_v4  ;;  %v5494_v6 = vadd.f32 %v2310_v39, %v1238_v32  ;;  %v4721_v4 = vld [vmem:[%s6057_s3 + $0x410] ss:$8 sps:$4 sm:$0xff]   ;;  %v2379_v39 = vadd.s32 24, %v5113_v7  ;;  %v4722_v53 = vld [vmem:[%s6057_s3 + $0x480] ss:$8 sps:$4 sm:$0xff]  }
 0x519   :  { %v4186_v9 = vpop.f32.mrf.mxu1  ;;  %4289 = vmatpush3.bf16.msra.mxu0 %v4721_v4 }
 0x51a   :  { %v2312_v10 = vadd.f32 %v4185_v36, %v5470_v18  ;;  %v2441_v13 = vmul.f32 %v5498_v19, %v5494_v6  ;;  %vm2396_vm3 = vcmp.eq.s32.totalorder %v2379_v39, %v5476_v45  ;;  %4290 = vmatprep.subr.bf16.mxu0 %v4722_v53  ;;  %v2381_v53 = vadd.s32 40, %v5113_v7 }
 0x51b   :  { %v4187_v63 = vpop.f32.mrf.mxu1  ;;  %v5538_v4 = vsel %vm2396_vm3, 1.0, %v4757_v51 }
 0x51c   :  { %v5508_v25 = vadd.f32 %v2312_v10, %v1240_v29  ;;  %v4188_v32 = vadd.f32 %v4187_v63, %v4186_v9  ;;  %v2380_v9 = vadd.s32 32, %v5113_v7  ;;  %v4723_v10 = vld [vmem:[%s6057_s3 + $0x400] ss:$8 sps:$4 sm:$0xff]   ;;  %vm2398_vm5 = vcmp.eq.s32.totalorder %v2381_v53, %v5476_v45 }
 0x51d   :  { %v4189_v36 = vpop.f32.mrf.mxu1  ;;  %4291 = vmatpush3.bf16.msra.mxu0 %v4723_v10  ;;  %v2383_v53 = vadd.s32 56, %v5113_v7 }
 0x51e   :  { %v2443_v41 = vmul.f32 %v5501_v57, %v5508_v25  ;;  %v2314_v29 = vadd.f32 %v4188_v32, %v5470_v18  ;;  %vm2397_vm4 = vcmp.eq.s32.totalorder %v2380_v9, %v5476_v45 }
 0x51f   :  { %v4190_v20 = vpop.f32.mrf.mxu1  ;;  %v5555_v40 = vsel %vm2397_vm4, 1.0, %v4757_v51  ;;  %vm2400_vm7 = vcmp.eq.s32.totalorder %v2383_v53, %v5476_v45  ;;  %v2385_v53 = vadd.s32 72, %v5113_v7 }
 0x520   :  { %v2473_v63 = vadd.f32 %v2443_v41, %v2441_v13  ;;  %v5531_v62 = vadd.f32 %v2314_v29, %v1242_v56  ;;  %v4191_v26 = vadd.f32 %v4190_v20, %v4189_v36  ;;  %v4724_v41 = vld [vmem:[%s6057_s3 + $0x3f0] ss:$8 sps:$4 sm:$0xff]  }
 0x521   :  { %v4192_v32 = vpop.f32.mrf.mxu1  ;;  %4298 = vmatprep.subr.bf16.mxu0 %v4724_v41  ;;  %vm2402_vm9 = vcmp.eq.s32.totalorder %v2385_v53, %v5476_v45  ;;  %v2387_v53 = vadd.s32 88, %v5113_v7 }
 0x522   :  { %v2445_v21 = vmul.f32 %v5523_v11, %v5531_v62  ;;  %v2316_v8 = vadd.f32 %v4191_v26, %v5470_v18 }
 0x523   :  { %v4193_v22 = vpop.f32.mrf.mxu1  ;;  %vm2404_vm11 = vcmp.eq.s32.totalorder %v2387_v53, %v5476_v45  ;;  %v2389_v53 = vadd.s32 104, %v5113_v7 }
 0x524   :  { %v2474_v46 = vadd.f32 %v2473_v63, %v2445_v21  ;;  %v5543_v56 = vadd.f32 %v2316_v8, %v1244_v50  ;;  %v4194_v39 = vadd.f32 %v4193_v22, %v4192_v32  ;;  %v2382_v8 = vadd.s32 48, %v5113_v7 }
 0x525   :  { %v4195_v36 = vpop.f32.mrf.mxu1  ;;  %v5567_v32 = vsel %vm2398_vm5, 1.0, %v4757_v51  ;;  %v5633_v21 = vsel %vm2403_vm10, 1.0, %v4757_v51  ;;  %vm2406_vm13 = vcmp.eq.s32.totalorder %v2389_v53, %v5476_v45  ;;  %v2391_v53 = vadd.s32 120, %v5113_v7 }
 0x526   :  { %v2447_v13 = vmul.f32 %v5538_v4, %v5543_v56  ;;  %v2318_v26 = vadd.f32 %v4194_v39, %v5470_v18  ;;  %vm2399_vm6 = vcmp.eq.s32.totalorder %v2382_v8, %v5476_v45 }
 0x527   :  { %v4196_v50 = vpop.f32.mrf.mxu1  ;;  %vm2408_vm15 = vcmp.eq.s32.totalorder %v2391_v53, %v5476_v45 }
 0x528   :  { %v2475_v22 = vadd.f32 %v2474_v46, %v2447_v13  ;;  %v5560_v29 = vadd.f32 %v2318_v26, %v1246_v15  ;;  %v4197_v20 = vadd.f32 %v4196_v50, %v4195_v36  ;;  %v5581_v50 = vsel %vm2399_vm6, 1.0, %v4757_v51 }
 0x529   :  { %v4198_v9 = vpop.f32.mrf.mxu1 }
 0x52a   :  { %v2449_v10 = vmul.f32 %v5555_v40, %v5560_v29  ;;  %v2320_v63 = vadd.f32 %v4197_v20, %v5470_v18 }
 0x52b   :  { %v4199_v39 = vpop.f32.mrf.mxu1 }
 0x52c   :  { %v2476_v46 = vadd.f32 %v2475_v22, %v2449_v10  ;;  %v5572_v3 = vadd.f32 %v2320_v63, %v1248_v5  ;;  %v4200_v15 = vadd.f32 %v4199_v39, %v4198_v9  ;;  %v5593_v39 = vsel %vm2400_vm7, 1.0, %v4757_v51 }
 0x52d   :  { %v4201_v36 = vpop.f32.mrf.mxu1 }
 0x52e   :  { %v2451_v13 = vmul.f32 %v5567_v32, %v5572_v3  ;;  %v2322_v26 = vadd.f32 %v4200_v15, %v5470_v18 }
 0x52f   :  { %v4202_v8 = vpop.f32.mrf.mxu1 }
 0x530   :  { %v2477_v5 = vadd.f32 %v2476_v46, %v2451_v13  ;;  %v5586_v22 = vadd.f32 %v2322_v26, %v1250_v47  ;;  %v4203_v20 = vadd.f32 %v4202_v8, %v4201_v36  ;;  %v5619_v8 = vsel %vm2402_vm9, 1.0, %v4757_v51 }
 0x531   :  { %v4204_v9 = vpop.f32.mrf.mxu1 }
 0x532   :  { %v2453_v10 = vmul.f32 %v5581_v50, %v5586_v22  ;;  %v2324_v63 = vadd.f32 %v4203_v20, %v5470_v18  ;;  %v5607_v20 = vsel %vm2401_vm8, 1.0, %v4757_v51 }
 0x533   :  { %v4205_v15 = vpop.f32.mrf.mxu1 }
 0x534   :  { %v2478_v46 = vadd.f32 %v2477_v5, %v2453_v10  ;;  %v5598_v30 = vadd.f32 %v2324_v63, %v1252_v37  ;;  %v4206_v47 = vadd.f32 %v4205_v15, %v4204_v9  ;;  %v6097_v5 = vmax.f32 %v5242_v1, 0.0 }
 0x535   :  { %v4207_v36 = vpop.f32.mrf.mxu1  ;;  %v6099_v1 = vmax.f32 %v5231_v55, 0.0  ;;  %v2388_v55 = vadd.s32 96, %v5113_v7 }
 0x536   :  { %v2455_v13 = vmul.f32 %v5593_v39, %v5598_v30  ;;  %v2326_v26 = vadd.f32 %v4206_v47, %v5470_v18 }
 0x537   :  { %v4208_v59 = vpop.f32.mrf.mxu1  ;;  %vm2405_vm12 = vcmp.eq.s32.totalorder %v2388_v55, %v5476_v45 }
 0x538   :  { %v2479_v37 = vadd.f32 %v2478_v46, %v2455_v13  ;;  %v5612_v9 = vadd.f32 %v2326_v26, %v6097_v5  ;;  %v4209_v10 = vadd.f32 %v4208_v59, %v4207_v36 }
 0x539   :  { %v4210_v63 = vpop.f32.mrf.mxu1 }
 0x53a   :  { %6098 = vst [vmem:[#allocation6_spill] sm:$0xff] %v5612_v9  ;;  %v2457_v15 = vmul.f32 %v5607_v20, %v5612_v9  ;;  %v2328_v47 = vadd.f32 %v4209_v10, %v5470_v18  ;;  %v5645_v10 = vsel %vm2404_vm11, 1.0, %v4757_v51  ;;  %v5659_v9 = vsel %vm2405_vm12, 1.0, %v4757_v51 }
 0x53b   :  { %v4211_v41 = vpop.f32.mrf.mxu1 }
 0x53c   :  { %v2480_v46 = vadd.f32 %v2479_v37, %v2457_v15  ;;  %v5624_v13 = vadd.f32 %v2328_v47, %v6099_v1  ;;  %v4212_v36 = vadd.f32 %v4211_v41, %v4210_v63  ;;  %v6100_v41 = vmax.f32 %v5268_v58, 0.0 }
 0x53d   :  { %v4213_v26 = vpop.f32.mrf.mxu1  ;;  %v6102_v58 = vmax.f32 %v5257_v35, 0.0  ;;  %v2390_v35 = vadd.s32 112, %v5113_v7 }
 0x53e   :  { %v2459_v59 = vmul.f32 %v5619_v8, %v5624_v13  ;;  %v2330_v5 = vadd.f32 %v4212_v36, %v5470_v18 }
 0x53f   :  { %v4214_v17 = vpop.f32.mrf.mxu1  ;;  %vm2407_vm14 = vcmp.eq.s32.totalorder %v2390_v35, %v5476_v45 }
 0x540   :  { %v2481_v37 = vadd.f32 %v2480_v46, %v2459_v59  ;;  %v5638_v63 = vadd.f32 %v2330_v5, %v6100_v41  ;;  %v4215_v15 = vadd.f32 %v4214_v17, %v4213_v26 }
 0x541   :  { %v4216_v47 = vpop.f32.mrf.mxu1 }
 0x542   :  { %6101 = vst [vmem:[#allocation7_spill] sm:$0xff] %v5638_v63  ;;  %v2461_v1 = vmul.f32 %v5633_v21, %v5638_v63  ;;  %v2332_v36 = vadd.f32 %v4215_v15, %v5470_v18  ;;  %v5671_v15 = vsel %vm2406_vm13, 1.0, %v4757_v51 }
 0x543   :  { %v4217_v12 = vpop.f32.mrf.mxu1 }
 0x544   :  { %v2482_v46 = vadd.f32 %v2481_v37, %v2461_v1  ;;  %v5650_v59 = vadd.f32 %v2332_v36, %v6102_v58  ;;  %v4218_v26 = vadd.f32 %v4217_v12, %v4216_v47  ;;  %v6104_v12 = vmax.f32 %v5294_v16, 0.0 }
 0x545   :  { %v4219_v5 = vpop.f32.mrf.mxu1  ;;  %v6106_v16 = vmax.f32 %v5283_v28, 0.0  ;;  %v6108_v28 = vmax.f32 %v5320_v33, 0.0 }
 0x546   :  { %6103 = vst [vmem:[#allocation8_spill] sm:$0xff] %v5650_v59  ;;  %v2463_v17 = vmul.f32 %v5645_v10, %v5650_v59  ;;  %v2334_v41 = vadd.f32 %v4218_v26, %v5470_v18  ;;  %v5685_v59 = vsel %vm2407_vm14, 1.0, %v4757_v51 }
 0x547   :  { %v4220_v55 = vpop.f32.mrf.mxu1 }
 0x548   :  { %v2483_v37 = vadd.f32 %v2482_v46, %v2463_v17  ;;  %v5664_v47 = vadd.f32 %v2334_v41, %v6104_v12  ;;  %v4221_v1 = vadd.f32 %v4220_v55, %v4219_v5 }
 0x549   :  { %v4222_v36 = vpop.f32.mrf.mxu1 }
 0x54a   :  { %6105 = vst [vmem:[#allocation9_spill] sm:$0xff] %v5664_v47  ;;  %v2465_v58 = vmul.f32 %v5659_v9, %v5664_v47  ;;  %v2336_v26 = vadd.f32 %v4221_v1, %v5470_v18 }
 0x54b   :  { %v4223_v63 = vpop.f32.mrf.mxu1 }
 0x54c   :  { %v2484_v46 = vadd.f32 %v2483_v37, %v2465_v58  ;;  %v5676_v17 = vadd.f32 %v2336_v26, %v6106_v16  ;;  %v4224_v5 = vadd.f32 %v4223_v63, %v4222_v36 }
 0x54d   :  { %v4225_v41 = vpop.f32.mrf.mxu1 }
 0x54e   :  { %6107 = vst [vmem:[#allocation10_spill] sm:$0xff] %v5676_v17  ;;  %v2467_v55 = vmul.f32 %v5671_v15, %v5676_v17  ;;  %v2338_v12 = vadd.f32 %v4224_v5, %v5470_v18  ;;  %v5696_v5 = vsel %vm2408_vm15, 1.0, %v4757_v51 }
 0x54f   :  { %v4226_v35 = vpop.f32.mrf.mxu1 }
 0x550   :  { %v2485_v37 = vadd.f32 %v2484_v46, %v2467_v55  ;;  %v5689_v58 = vadd.f32 %v2338_v12, %v6108_v28  ;;  %v4227_v63 = vadd.f32 %v4226_v35, %v4225_v41  ;;  %v6110_v46 = vmax.f32 %v5309_v44, 0.0 }
 0x551   :  { %v4228_v36 = vpop.f32.mrf.mxu1 }
 0x552   :  { %6109 = vst [vmem:[#allocation11_spill] sm:$0xff] %v5689_v58  ;;  %v2469_v26 = vmul.f32 %v5685_v59, %v5689_v58  ;;  %v2340_v16 = vadd.f32 %v4227_v63, %v5470_v18 }
 0x553   :  { %v4229_v1 = vpop.f32.mrf.mxu1 }
 0x554   :  { %v2486_v47 = vadd.f32 %v2485_v37, %v2469_v26  ;;  %v5700_v55 = vadd.f32 %v2340_v16, %v6110_v46  ;;  %v6112_v37 = vsub.s32 1, %v5113_v7 }
 0x555   :  { %v4231_v33 = vpop.f32.mrf.mxu1 }
 0x556   :  { %6111 = vst [vmem:[#allocation12_spill] sm:$0xff] %v5700_v55  ;;  %v2471_v41 = vmul.f32 %v5696_v5, %v5700_v55  ;;  %v5711_v44 = vrot.slane %v5460_v14, %v6112_v37 }
 0x557   :  { %v4232_v53 = vpop.f32.mrf.mxu1 }
 0x558   :  { %v5706_v12 = vadd.f32 %v2486_v47, %v2471_v41  ;;  %v6113_v47 = vmax.f32 %v5160_v43, 0.0  ;;  %v4233_v55 = vadd.f32 %v4232_v53, %v4231_v33 }
 0x559   :  { %v4234_v18 = vpop.f32.mrf.mxu1 }
 0x55b   :  { %v4235_v35 = vpop.f32.mrf.mxu1 }
 0x55c   :  { %v4236_v51 = vadd.f32 %v4235_v35, %v4234_v18  ;;  %v6114_v18 = vmax.f32 %v5167_v49, 0.0  ;;  %v6116_v49 = vmax.f32 %v5193_v42, 0.0  ;;  %v6117_v42 = vmax.f32 %v5141_v27, 0.0 }
 0x55d   :  { %v4237_v28 = vpop.f32.mrf.mxu1 }
 0x55e   :  { %v2315_v26 = vadd.f32 %v4236_v51, %v5711_v44 }
 0x55f   :  { %v4238_v63 = vpop.f32.mrf.mxu1 }
 0x560   :  { %v4239_v16 = vadd.f32 %v4238_v63, %v4237_v28  ;;  %v5717_v41 = vadd.f32 %v2315_v26, %v6113_v47  ;;  %v6115_v26 = vmax.f32 %v5186_v0, 0.0 }
 0x561   :  { %v4240_v46 = vpop.f32.mrf.mxu1 }
 0x562   :  { %v2317_v17 = vadd.f32 %v4239_v16, %v5711_v44 }
 0x563   :  { %v4241_v45 = vpop.f32.mrf.mxu1 }
 0x564   :  { %v5721_v35 = vadd.f32 %v2317_v17, %v6114_v18  ;;  %v4242_v7 = vadd.f32 %v4241_v45, %v4240_v46  ;;  %v4230_v46 = vadd.f32 %v4229_v1, %v4228_v36  ;;  %v6118_v36 = vmax.f32 %v5212_v24, 0.0 }
 0x565   :  { %v4243_v58 = vpop.f32.mrf.mxu1 }
 0x566   :  { %v2691_v14 = vpack.c.bf16 %v5721_v35, %v5717_v41  ;;  %v2319_v51 = vadd.f32 %v4242_v7, %v5711_v44  ;;  %v2311_v0 = vadd.f32 %v4230_v46, %v5711_v44 }
 0x567   :  { %v4244_v37 = vpop.f32.mrf.mxu1 }
 0x568   :  { %v4245_v28 = vadd.f32 %v4244_v37, %v4243_v58  ;;  %v5729_v47 = vadd.f32 %v2319_v51, %v6115_v26  ;;  %v2313_v58 = vadd.f32 %v4233_v55, %v5711_v44  ;;  %v6119_v55 = vmax.f32 %v5219_v48, 0.0 }
 0x569   :  { %v4246_v63 = vpop.f32.mrf.mxu1 }
 0x56a   :  { %v2321_v16 = vadd.f32 %v4245_v28, %v5711_v44 }
 0x56b   :  { %v4247_v43 = vpop.f32.mrf.mxu1 }
 0x56c   :  { %v5733_v17 = vadd.f32 %v2321_v16, %v6116_v49  ;;  %v4248_v45 = vadd.f32 %v4247_v43, %v4246_v63  ;;  %v5743_v16 = vadd.f32 %v2313_v58, %v6117_v42  ;;  %v6120_v49 = vmax.f32 %v5135_v23, 0.0 }
 0x56d   :  { %v4249_v18 = vpop.f32.mrf.mxu1 }
 0x56e   :  { %v2693_v7 = vpack.c.bf16 %v5733_v17, %v5729_v47  ;;  %v2323_v33 = vadd.f32 %v4248_v45, %v5711_v44  ;;  %v5755_v45 = vadd.f32 %v2311_v0, %v6120_v49 }
 0x56f   :  { %v4250_v37 = vpop.f32.mrf.mxu1 }
 0x570   :  { %v4251_v53 = vadd.f32 %v4250_v37, %v4249_v18  ;;  %v5747_v63 = vadd.f32 %v2323_v33, %v6118_v36  ;;  %v2444_v18 = vmul.f32 %v5501_v57, %v5743_v16  ;;  %v2442_v48 = vmul.f32 %v5498_v19, %v5755_v45 }
 0x571   :  { %v4252_v51 = vpop.f32.mrf.mxu1  ;;  %v2446_v33 = vmul.f32 %v5523_v11, %v5717_v41  ;;  %v6121_v57 = vmax.f32 %v5238_v61, 0.0  ;;  %v2450_v11 = vmul.f32 %v5555_v40, %v5729_v47  ;;  %v6138_v41 = vld [vmem:[#allocation10_spill] sm:$0xff]  ;;  %v6141_v47 = vld [vmem:[#allocation12_spill] sm:$0xff] }
 0x572   :  { %v2325_v28 = vadd.f32 %v4251_v53, %v5711_v44  ;;  %v2494_v0 = vadd.f32 %v2444_v18, %v2442_v48 }
 0x573   :  { %v4253_v1 = vpop.f32.mrf.mxu1 }
 0x574   :  { %v5751_v43 = vadd.f32 %v2325_v28, %v6119_v55  ;;  %v4254_v26 = vadd.f32 %v4253_v1, %v4252_v51  ;;  %v2448_v51 = vmul.f32 %v5538_v4, %v5721_v35  ;;  %v6122_v1 = vmax.f32 %v5245_v54, 0.0  ;;  %v6139_v35 = vld [vmem:[#allocation9_spill] sm:$0xff] }
 0x575   :  { %v4255_v46 = vpop.f32.mrf.mxu1  ;;  %v2495_v55 = vadd.f32 %v2494_v0, %v2446_v33  ;;  %v2452_v4 = vmul.f32 %v5567_v32, %v5733_v17  ;;  %v6124_v32 = vmax.f32 %v5271_v60, 0.0  ;;  %v6142_v17 = vld [vmem:[#allocation11_spill] sm:$0xff] }
 0x576   :  { %v2695_v27 = vpack.c.bf16 %v5751_v43, %v5747_v63  ;;  %v2327_v24 = vadd.f32 %v4254_v26, %v5711_v44 }
 0x577   :  { %v4256_v58 = vpop.f32.mrf.mxu1 }
 0x578   :  { %v4257_v37 = vadd.f32 %v4256_v58, %v4255_v46  ;;  %v5771_v42 = vadd.f32 %v2327_v24, %v6121_v57  ;;  %v2496_v46 = vadd.f32 %v2495_v55, %v2448_v51 }
 0x579   :  { %v4258_v23 = vpop.f32.mrf.mxu1 }
 0x57a   :  { %v2329_v53 = vadd.f32 %v4257_v37, %v5711_v44  ;;  %v2497_v54 = vadd.f32 %v2496_v46, %v2450_v11  ;;  %v2454_v37 = vmul.f32 %v5581_v50, %v5747_v63  ;;  %v2458_v50 = vmul.f32 %v5607_v20, %v5771_v42  ;;  %v4743_v63 = vld [vmem:[%s6057_s3 + $0x540] ss:$8 sps:$4 sm:$0xff]  }
 0x57b   :  { %v4259_v28 = vpop.f32.mrf.mxu1 }
 0x57c   :  { %v5775_v36 = vadd.f32 %v2329_v53, %v6122_v1  ;;  %v4260_v19 = vadd.f32 %v4259_v28, %v4258_v23  ;;  %v2498_v40 = vadd.f32 %v2497_v54, %v2452_v4  ;;  %v2456_v23 = vmul.f32 %v5593_v39, %v5751_v43  ;;  %v4744_v43 = vld [vmem:[%s6057_s3 + $0x530] ss:$8 sps:$4 sm:$0xff]  }
 0x57d   :  { %v4261_v26 = vpop.f32.mrf.mxu1  ;;  %v6123_v53 = vmax.f32 %v5264_v52, 0.0 }
 0x57e   :  { %v2697_v49 = vpack.c.bf16 %v5775_v36, %v5771_v42  ;;  %v2331_v18 = vadd.f32 %v4260_v19, %v5711_v44  ;;  %v2499_v1 = vadd.f32 %v2498_v40, %v2454_v37  ;;  %v2460_v52 = vmul.f32 %v5619_v8, %v5775_v36  ;;  %v4746_v42 = vld [vmem:[%s6057_s3 + $0x510] ss:$8 sps:$4 sm:$0xff]   ;;  %v4747_v36 = vld [vmem:[%s6057_s3 + $0x500] ss:$8 sps:$4 sm:$0xff]  }
 0x57f   :  { %v4262_v61 = vpop.f32.mrf.mxu1  ;;  %v6126_v37 = vmax.f32 %v5297_v2, 0.0 }
 0x580   :  { %v4263_v58 = vadd.f32 %v4262_v61, %v4261_v26  ;;  %v5791_v0 = vadd.f32 %v2331_v18, %v6123_v53  ;;  %v2500_v11 = vadd.f32 %v2499_v1, %v2456_v23  ;;  %v6125_v61 = vmax.f32 %v5290_v34, 0.0 }
 0x581   :  { %v4264_v24 = vpop.f32.mrf.mxu1  ;;  %v2488_v53 = vrot.slane %v5706_v12, 4 }
 0x582   :  { %v2333_v48 = vadd.f32 %v4263_v58, %v5711_v44  ;;  %v2501_v46 = vadd.f32 %v2500_v11, %v2458_v50  ;;  %v2462_v4 = vmul.f32 %v5633_v21, %v5791_v0 }
 0x583   :  { %v4265_v33 = vpop.f32.mrf.mxu1 }
 0x584   :  { %v5795_v51 = vadd.f32 %v2333_v48, %v6124_v32  ;;  %v4266_v28 = vadd.f32 %v4265_v33, %v4264_v24  ;;  %v2502_v54 = vadd.f32 %v2501_v46, %v2460_v52  ;;  %v6128_v52 = vmax.f32 %v5323_v38, 0.0 }
 0x585   :  { %v4267_v57 = vpop.f32.mrf.mxu1 }
 0x586   :  { %v2335_v19 = vadd.f32 %v4266_v28, %v5711_v44  ;;  %v2699_v55 = vpack.c.bf16 %v5795_v51, %v5791_v0  ;;  %v2464_v24 = vmul.f32 %v5645_v10, %v5795_v51  ;;  %v2503_v33 = vadd.f32 %v2502_v54, %v2462_v4  ;;  %v4749_v0 = vld [vmem:[%s6057_s3 + $0x660] ss:$8 sps:$4 sm:$0xff]   ;;  %v4750_v51 = vld [vmem:[%s6057_s3 + $0x650] ss:$8 sps:$4 sm:$0xff]  }
 0x587   :  { %v4268_v39 = vpop.f32.mrf.mxu1  ;;  %v6127_v10 = vmax.f32 %v5316_v31, 0.0 }
 0x588   :  { %v4269_v26 = vadd.f32 %v4268_v39, %v4267_v57  ;;  %v5808_v18 = vadd.f32 %v2335_v19, %v6125_v61  ;;  %v2504_v28 = vadd.f32 %v2503_v33, %v2464_v24  ;;  %v2489_v39 = vadd.f32 %v2488_v53, %v5706_v12  ;;  %v4729_v53 = vld [vmem:[%s6057_s3 + $0x350] ss:$8 sps:$4 sm:$0xff]  }
 0x589   :  { %v4270_v60 = vpop.f32.mrf.mxu1  ;;  %v2689_v33 = vpack.c.bf16 %v5743_v16, %v5755_v45  ;;  %v4730_v16 = vld [vmem:[%s6057_s3 + $0x3c0] ss:$8 sps:$4 sm:$0xff]  }
 0x58a   :  { %v2337_v20 = vadd.f32 %v4269_v26, %v5711_v44  ;;  %v2466_v21 = vmul.f32 %v5659_v9, %v5808_v18  ;;  %v2490_v46 = vrot.slane %v2489_v39, 2  ;;  %v4731_v45 = vld [vmem:[%s6057_s3 + $0x340] ss:$8 sps:$4 sm:$0xff]  }
 0x58b   :  { %v4271_v58 = vpop.f32.mrf.mxu1 }
 0x58c   :  { %v5815_v8 = vadd.f32 %v2337_v20, %v6126_v37  ;;  %v4272_v48 = vadd.f32 %v4271_v58, %v4270_v60  ;;  %v2505_v50 = vadd.f32 %v2504_v28, %v2466_v21  ;;  %v4727_v21 = vld [vmem:[%s6057_s3 + $0x360] ss:$8 sps:$4 sm:$0xff]   ;;  %v4733_v28 = vld [vmem:[%s6057_s3 + $0x330] ss:$8 sps:$4 sm:$0xff]  }
 0x58d   :  { %v4273_v40 = vpop.f32.mrf.mxu1 }
 0x58e   :  { %v2339_v34 = vadd.f32 %v4272_v48, %v5711_v44  ;;  %v2701_v23 = vpack.c.bf16 %v5815_v8, %v5808_v18  ;;  %v2468_v2 = vmul.f32 %v5671_v15, %v5815_v8  ;;  %v4725_v48 = vld [vmem:[%s6057_s3 + $0x370] ss:$8 sps:$4 sm:$0xff]  }
 0x58f   :  { %v4274_v32 = vpop.f32.mrf.mxu1  ;;  %v4752_v18 = vld [vmem:[%s6057_s3 + $0x630] ss:$8 sps:$4 sm:$0xff]  }
 0x590   :  { %v5827_v57 = vadd.f32 %v2339_v34, %v6127_v10  ;;  %v4275_v1 = vadd.f32 %v4274_v32, %v4273_v40  ;;  %v2506_v11 = vadd.f32 %v2505_v50, %v2468_v2  ;;  %v4726_v40 = vld [vmem:[%s6057_s3 + $0x3e0] ss:$8 sps:$4 sm:$0xff]   ;;  %v4728_v34 = vld [vmem:[%s6057_s3 + $0x3d0] ss:$8 sps:$4 sm:$0xff]  }
 0x591   :  { %v4732_v32 = vld [vmem:[%s6057_s3 + $0x3b0] ss:$8 sps:$4 sm:$0xff]   ;;  %v4734_v2 = vld [vmem:[%s6057_s3 + $0x3a0] ss:$8 sps:$4 sm:$0xff]  }
 0x592   :  { %v2470_v9 = vmul.f32 %v5685_v59, %v5827_v57  ;;  %v2341_v19 = vadd.f32 %v4275_v1, %v5711_v44  ;;  %v2491_v59 = vadd.f32 %v2490_v46, %v2489_v39  ;;  %v4735_v10 = vld [vmem:[%s6057_s3 + $0x320] ss:$8 sps:$4 sm:$0xff]   ;;  %v4736_v1 = vld [vmem:[%s6057_s3 + $0x390] ss:$8 sps:$4 sm:$0xff]   ;;  %v6129_v39 = vpack.c.bf16 %v5508_v25, %v5494_v6 }
 0x593   :  { %v4737_v50 = vld [vmem:[%s6057_s3 + $0x310] ss:$8 sps:$4 sm:$0xff]   ;;  %v6132_v6 = vpack.c.bf16 %v5598_v30, %v5586_v22 }
 0x594   :  { %v5835_v26 = vadd.f32 %v2341_v19, %v6128_v52  ;;  %v2507_v60 = vadd.f32 %v2506_v11, %v2470_v9  ;;  %v2492_v58 = vrot.slane %v2491_v59, 1  ;;  %v4738_v9 = vld [vmem:[%s6057_s3 + $0x380] ss:$8 sps:$4 sm:$0xff]   ;;  %v6130_v11 = vpack.c.bf16 %v5543_v56, %v5531_v62  ;;  %v4740_v56 = vld [vmem:[%s6057_s3 + $0x570] ss:$8 sps:$4 sm:$0xff]  }
 0x595   :  { %v4739_v19 = vld [vmem:[%s6057_s3 + $0x300] ss:$8 sps:$4 sm:$0xff]   ;;  %v6131_v52 = vpack.c.bf16 %v5572_v3, %v5560_v29  ;;  %v6135_v3 = vld [vmem:[#allocation8_spill] sm:$0xff]  ;;  %v6136_v22 = vld [vmem:[#allocation7_spill] sm:$0xff] }
 0x596   :  { %v2472_v31 = vmul.f32 %v5696_v5, %v5835_v26  ;;  %v2703_v15 = vpack.c.bf16 %v5835_v26, %v5827_v57  ;;  %v2493_v24 = vadd.f32 %v2492_v58, %v2491_v59  ;;  %v6133_v62 = vld [vmem:[#allocation6_spill] sm:$0xff]  ;;  %v6137_v30 = vpack.c.bf16 %v6135_v3, %v6136_v22 }
 0x597   :  { %v6134_v25 = vpack.c.bf16 %v5624_v13, %v6133_v62  ;;  %v4741_v29 = vld [vmem:[%s6057_s3 + $0x560] ss:$8 sps:$4 sm:$0xff]   ;;  %v4742_v13 = vld [vmem:[%s6057_s3 + $0x550] ss:$8 sps:$4 sm:$0xff]  }
 0x598   :  { %v2508_v4 = vadd.f32 %v2507_v60, %v2472_v31  ;;  %v2515_v5 = vpack.c.bf16 %v2493_v24, %v2493_v24  ;;  %v3665_v31 = vld [vmem:[%s6059_s4 + $0x6] sm:$0x1] }
 0x59a   :  { %v2509_v61 = vrot.slane %v2508_v4, 4 }
 0x59c   :  { %v2510_v20 = vadd.f32 %v2509_v61, %v2508_v4 }
 0x59e   :  { %v2511_v44 = vrot.slane %v2510_v20, 2 }
 0x5a0   :  { %v2512_v12 = vadd.f32 %v2511_v44, %v2510_v20  ;;  %v6144_v20 = vld [vmem:[#allocation5_spill] sm:$0xff] }
 0x5a2   :  { %v2513_v54 = vrot.slane %v2512_v12, 1 }
 0x5a4   :  { %v2514_v38 = vadd.f32 %v2513_v54, %v2512_v12 }
 0x5a6   :  { %v2516_v37 = vpack.c.bf16 %v2514_v38, %v2514_v38 }
 0x5a8   :  { %2680 = vmatprep.mubr.bf16.mxu0 %v2516_v37 }
 0x5a9   :  { %2681 = vmatmul.mubr.bf16.vlgmr.msra.gmra.mxu0 %v2515_v5 }
 0x5aa   :  { %4299 = vmatpush3.bf16.msra.mxu0 %v4725_v48  ;;  %2869 = vmatprep.mubr.bf16.mxu0 %v2689_v33 }
 0x5ab   :  { %4300 = vmatprep.subr.bf16.mxu0 %v4726_v40 }
 0x5ae   :  { %4301 = vmatpush3.bf16.msra.mxu0 %v4727_v21 }
 0x5af   :  { %4302 = vmatprep.subr.bf16.mxu0 %v4728_v34 }
 0x5b2   :  { %4303 = vmatpush3.bf16.msra.mxu0 %v4729_v53 }
 0x5b3   :  { %4304 = vmatprep.subr.bf16.mxu0 %v4730_v16 }
 0x5b6   :  { %4305 = vmatpush3.bf16.msra.mxu0 %v4731_v45 }
 0x5b7   :  { %4306 = vmatprep.subr.bf16.mxu0 %v4732_v32 }
 0x5ba   :  { %4307 = vmatpush3.bf16.msra.mxu0 %v4733_v28 }
 0x5bb   :  { %4308 = vmatprep.subr.bf16.mxu0 %v4734_v2 }
 0x5be   :  { %4309 = vmatpush3.bf16.msra.mxu0 %v4735_v10 }
 0x5bf   :  { %4310 = vmatprep.subr.bf16.mxu0 %v4736_v1 }
 0x5c2   :  { %4311 = vmatpush3.bf16.msra.mxu0 %v4737_v50 }
 0x5c3   :  { %4312 = vmatprep.subr.bf16.mxu0 %v4738_v9 }
 0x5c6   :  { %4313 = vmatpush3.bf16.msra.mxu0 %v4739_v19 }
 0x5c7   :  { %4426 = vmatprep.subr.bf16.mxu0 %v4740_v56 }
 0x5c9   :  { %2870 = vmatmul.mubr.bf16.vlgmr.msra.gmra.mxu0 %v6129_v39 }
 0x5ca   :  { %2877 = vmatprep.mubr.bf16.mxu0 %v2691_v14  ;;  %4427 = vmatpush3.bf16.msra.mxu0 %v4740_v56  ;;  %v6140_v14 = vpack.c.bf16 %v6138_v41, %v6139_v35 }
 0x5cb   :  { %4428 = vmatprep.subr.bf16.mxu0 %v4741_v29 }
 0x5ce   :  { %4429 = vmatpush3.bf16.msra.mxu0 %v4741_v29 }
 0x5cf   :  { %4430 = vmatprep.subr.bf16.mxu0 %v4742_v13 }
 0x5d1   :  { %2878 = vmatmul.mubr.bf16.gmra.mxu0 %v6130_v11 }
 0x5d2   :  { %2885 = vmatprep.mubr.bf16.mxu0 %v2693_v7  ;;  %4431 = vmatpush3.bf16.msra.mxu0 %v4742_v13  ;;  %v6143_v7 = vpack.c.bf16 %v6141_v47, %v6142_v17 }
 0x5d3   :  { %4432 = vmatprep.subr.bf16.mxu0 %v4743_v63 }
 0x5d6   :  { %4433 = vmatpush3.bf16.msra.mxu0 %v4743_v63 }
 0x5d7   :  { %4434 = vmatprep.subr.bf16.mxu0 %v4744_v43 }
 0x5d9   :  { %2886 = vmatmul.mubr.bf16.gmra.mxu0 %v6131_v52 }
 0x5da   :  { %2893 = vmatprep.mubr.bf16.mxu0 %v2695_v27  ;;  %4435 = vmatpush3.bf16.msra.mxu0 %v4744_v43  ;;  %v4745_v27 = vld [vmem:[%s6057_s3 + $0x520] ss:$8 sps:$4 sm:$0xff]  }
 0x5db   :  { %4436 = vmatprep.subr.bf16.mxu0 %v4745_v27 }
 0x5de   :  { %4437 = vmatpush3.bf16.msra.mxu0 %v4745_v27 }
 0x5df   :  { %4438 = vmatprep.subr.bf16.mxu0 %v4746_v42 }
 0x5e1   :  { %2894 = vmatmul.mubr.bf16.gmra.mxu0 %v6132_v6 }
 0x5e2   :  { %2901 = vmatprep.mubr.bf16.mxu0 %v2697_v49  ;;  %4439 = vmatpush3.bf16.msra.mxu0 %v4746_v42  ;;  %v4748_v49 = vld [vmem:[%s6057_s3 + $0x670] ss:$8 sps:$4 sm:$0xff]  }
 0x5e3   :  { %4440 = vmatprep.subr.bf16.mxu0 %v4747_v36  ;;  %4458 = vmatprep.subr.bf16.mxu1 %v4748_v49 }
 0x5e4   :  { %4459 = vmatpush3.bf16.msra.mxu1 %v4748_v49 }
 0x5e5   :  { %4460 = vmatprep.subr.bf16.mxu1 %v4749_v0 }
 0x5e6   :  { %4441 = vmatpush3.bf16.msra.mxu0 %v4747_v36 }
 0x5e8   :  { %4461 = vmatpush3.bf16.msra.mxu1 %v4749_v0 }
 0x5e9   :  { %2902 = vmatmul.mubr.bf16.gmra.mxu0 %v6134_v25  ;;  %4462 = vmatprep.subr.bf16.mxu1 %v4750_v51 }
 0x5ea   :  { %2909 = vmatprep.mubr.bf16.mxu0 %v2699_v55  ;;  %v4751_v55 = vld [vmem:[%s6057_s3 + $0x640] ss:$8 sps:$4 sm:$0xff]  }
 0x5ec   :  { %4463 = vmatpush3.bf16.msra.mxu1 %v4750_v51 }
 0x5ed   :  { %4464 = vmatprep.subr.bf16.mxu1 %v4751_v55 }
 0x5f0   :  { %4465 = vmatpush3.bf16.msra.mxu1 %v4751_v55 }
 0x5f1   :  { %2910 = vmatmul.mubr.bf16.gmra.mxu0 %v6137_v30  ;;  %4466 = vmatprep.subr.bf16.mxu1 %v4752_v18 }
 0x5f2   :  { %2917 = vmatprep.mubr.bf16.mxu0 %v2701_v23 }
 0x5f4   :  { %4467 = vmatpush3.bf16.msra.mxu1 %v4752_v18 }
 0x5f9   :  { %2918 = vmatmul.mubr.bf16.gmra.mxu0 %v6140_v14 }
 0x5fa   :  { %2925 = vmatprep.mubr.bf16.mxu0 %v2703_v15 }
 0x601   :  { %2926 = vmatmul.mubr.bf16.gmra.mxu0 %v6143_v7 }
 0x669   :  { %v4292_v8 = vpop.f32.mrf.mxu0 }
 0x66b   :  { %v4293_v23 = vpop.f32.mrf.mxu0 }
 0x66c   :  { %v4294_v60 = vadd.f32 %v4293_v23, %v4292_v8 }
 0x66d   :  { %v4295_v57 = vpop.f32.mrf.mxu0 }
 0x66e   :  { %v2683_v46 = vadd.f32 %v4294_v60, %v3665_v31 }
 0x66f   :  { %v4296_v26 = vpop.f32.mrf.mxu0 }
 0x670   :  { %v5976_v44 = vrot.slane %v2683_v46, %v6144_v20 }
 0x689   :  { %v4314_v15 = vpop.f32.mrf.mxu0 }
 0x68b   :  { %v4315_v4 = vpop.f32.mrf.mxu0 }
 0x68c   :  { %v4316_v61 = vadd.f32 %v4315_v4, %v4314_v15 }
 0x68d   :  { %v4317_v59 = vpop.f32.mrf.mxu0 }
 0x68e   :  { %v2872_v12 = vadd.f32 %v4316_v61, %v5976_v44 }
 0x68f   :  { %v4318_v58 = vpop.f32.mrf.mxu0 }
 0x690   :  { %v4319_v54 = vadd.f32 %v4318_v58, %v4317_v59  ;;  %v2934_v48 = vmax.f32 %v2872_v12, 0.0 }
 0x691   :  { %v4320_v24 = vpop.f32.mrf.mxu0 }
 0x692   :  { %v2875_v38 = vadd.f32 %v4319_v54, %v5976_v44 }
 0x693   :  { %v4321_v37 = vpop.f32.mrf.mxu0 }
 0x694   :  { %v2935_v5 = vmax.f32 %v2875_v38, 0.0  ;;  %v4322_v40 = vadd.f32 %v4321_v37, %v4320_v24 }
 0x695   :  { %v4323_v33 = vpop.f32.mrf.mxu0 }
 0x696   :  { %v2950_v21 = vpack.c.bf16 %v2935_v5, %v2934_v48  ;;  %v2880_v53 = vadd.f32 %v4322_v40, %v5976_v44 }
 0x697   :  { %v4324_v34 = vpop.f32.mrf.mxu0 }
 0x698   :  { %v4325_v16 = vadd.f32 %v4324_v34, %v4323_v33  ;;  %4442 = vmatprep.mubr.bf16.mxu0 %v2950_v21  ;;  %v2936_v2 = vmax.f32 %v2880_v53, 0.0 }
 0x699   :  { %v4326_v45 = vpop.f32.mrf.mxu0 }
 0x69a   :  { %v2883_v32 = vadd.f32 %v4325_v16, %v5976_v44 }
 0x69b   :  { %v4327_v28 = vpop.f32.mrf.mxu0 }
 0x69c   :  { %v2937_v10 = vmax.f32 %v2883_v32, 0.0  ;;  %v4328_v1 = vadd.f32 %v4327_v28, %v4326_v45 }
 0x69d   :  { %v4329_v50 = vpop.f32.mrf.mxu0 }
 0x69e   :  { %v2951_v9 = vpack.c.bf16 %v2937_v10, %v2936_v2  ;;  %v2888_v39 = vadd.f32 %v4328_v1, %v5976_v44 }
 0x69f   :  { %v4330_v19 = vpop.f32.mrf.mxu0 }
 0x6a0   :  { %v4331_v11 = vadd.f32 %v4330_v19, %v4329_v50  ;;  %4443 = vmatmul.mubr.bf16.vlgmr.msra.gmra.mxu0 %v2951_v9  ;;  %v2938_v25 = vmax.f32 %v2888_v39, 0.0  ;;  %v4753_v9 = vld [vmem:[%s6057_s3 + $0x620] ss:$8 sps:$4 sm:$0xff]   ;;  %v4754_v19 = vld [vmem:[%s6057_s3 + $0x610] ss:$8 sps:$4 sm:$0xff]  }
 0x6a1   :  { %v4332_v52 = vpop.f32.mrf.mxu0  ;;  %4468 = vmatprep.subr.bf16.mxu1 %v4753_v9 }
 0x6a2   :  { %v2891_v6 = vadd.f32 %v4331_v11, %v5976_v44  ;;  %4469 = vmatpush3.bf16.msra.mxu1 %v4753_v9 }
 0x6a3   :  { %v4333_v62 = vpop.f32.mrf.mxu0  ;;  %4470 = vmatprep.subr.bf16.mxu1 %v4754_v19 }
 0x6a4   :  { %v2939_v56 = vmax.f32 %v2891_v6, 0.0  ;;  %v4334_v29 = vadd.f32 %v4333_v62, %v4332_v52  ;;  %v3747_v52 = vld [vmem:[%s6059_s4 + $0x8] ss:$0 sm:$0xff] }
 0x6a5   :  { %v4335_v3 = vpop.f32.mrf.mxu0 }
 0x6a6   :  { %v2952_v22 = vpack.c.bf16 %v2939_v56, %v2938_v25  ;;  %v2896_v13 = vadd.f32 %v4334_v29, %v5976_v44  ;;  %4471 = vmatpush3.bf16.msra.mxu1 %v4754_v19 }
 0x6a7   :  { %v4336_v30 = vpop.f32.mrf.mxu0 }
 0x6a8   :  { %v4337_v41 = vadd.f32 %v4336_v30, %v4335_v3  ;;  %4446 = vmatprep.mubr.bf16.mxu0 %v2952_v22  ;;  %v2940_v17 = vmax.f32 %v2896_v13, 0.0 }
 0x6a9   :  { %v4338_v35 = vpop.f32.mrf.mxu0 }
 0x6aa   :  { %v2899_v14 = vadd.f32 %v4337_v41, %v5976_v44 }
 0x6ab   :  { %v4339_v47 = vpop.f32.mrf.mxu0 }
 0x6ac   :  { %v2941_v7 = vmax.f32 %v2899_v14, 0.0  ;;  %v4340_v63 = vadd.f32 %v4339_v47, %v4338_v35 }
 0x6ad   :  { %v4341_v43 = vpop.f32.mrf.mxu0 }
 0x6ae   :  { %v2953_v27 = vpack.c.bf16 %v2941_v7, %v2940_v17  ;;  %v2904_v36 = vadd.f32 %v4340_v63, %v5976_v44 }
 0x6af   :  { %v4342_v42 = vpop.f32.mrf.mxu0 }
 0x6b0   :  { %v4343_v49 = vadd.f32 %v4342_v42, %v4341_v43  ;;  %4447 = vmatmul.mubr.bf16.gmra.mxu0 %v2953_v27  ;;  %v2942_v18 = vmax.f32 %v2904_v36, 0.0 }
 0x6b1   :  { %v4344_v0 = vpop.f32.mrf.mxu0 }
 0x6b2   :  { %v2907_v51 = vadd.f32 %v4343_v49, %v5976_v44 }
 0x6b3   :  { %v4345_v55 = vpop.f32.mrf.mxu0 }
 0x6b4   :  { %v2943_v8 = vmax.f32 %v2907_v51, 0.0  ;;  %v4346_v23 = vadd.f32 %v4345_v55, %v4344_v0 }
 0x6b5   :  { %v4347_v57 = vpop.f32.mrf.mxu0 }
 0x6b6   :  { %v2954_v26 = vpack.c.bf16 %v2943_v8, %v2942_v18  ;;  %v2912_v31 = vadd.f32 %v4346_v23, %v5976_v44 }
 0x6b7   :  { %v4348_v60 = vpop.f32.mrf.mxu0 }
 0x6b8   :  { %v4349_v15 = vadd.f32 %v4348_v60, %v4347_v57  ;;  %4450 = vmatprep.mubr.bf16.mxu0 %v2954_v26  ;;  %v2944_v59 = vmax.f32 %v2912_v31, 0.0 }
 0x6b9   :  { %v4350_v46 = vpop.f32.mrf.mxu0 }
 0x6ba   :  { %v2915_v4 = vadd.f32 %v4349_v15, %v5976_v44 }
 0x6bb   :  { %v4351_v61 = vpop.f32.mrf.mxu0 }
 0x6bc   :  { %v2945_v20 = vmax.f32 %v2915_v4, 0.0  ;;  %v4352_v58 = vadd.f32 %v4351_v61, %v4350_v46 }
 0x6bd   :  { %v4353_v12 = vpop.f32.mrf.mxu0 }
 0x6be   :  { %v2955_v54 = vpack.c.bf16 %v2945_v20, %v2944_v59  ;;  %v2920_v38 = vadd.f32 %v4352_v58, %v5976_v44 }
 0x6bf   :  { %v4354_v24 = vpop.f32.mrf.mxu0 }
 0x6c0   :  { %v4355_v37 = vadd.f32 %v4354_v24, %v4353_v12  ;;  %4451 = vmatmul.mubr.bf16.gmra.mxu0 %v2955_v54  ;;  %v2946_v33 = vmax.f32 %v2920_v38, 0.0 }
 0x6c1   :  { %v4356_v48 = vpop.f32.mrf.mxu0 }
 0x6c2   :  { %v2923_v5 = vadd.f32 %v4355_v37, %v5976_v44 }
 0x6c3   :  { %v4357_v40 = vpop.f32.mrf.mxu0 }
 0x6c4   :  { %v2947_v21 = vmax.f32 %v2923_v5, 0.0  ;;  %v4358_v34 = vadd.f32 %v4357_v40, %v4356_v48 }
 0x6c5   :  { %v4359_v53 = vpop.f32.mrf.mxu0 }
 0x6c6   :  { %v2956_v16 = vpack.c.bf16 %v2947_v21, %v2946_v33  ;;  %v2928_v32 = vadd.f32 %v4358_v34, %v5976_v44 }
 0x6c7   :  { %v4360_v45 = vpop.f32.mrf.mxu0 }
 0x6c8   :  { %v4361_v28 = vadd.f32 %v4360_v45, %v4359_v53  ;;  %4454 = vmatprep.mubr.bf16.mxu0 %v2956_v16  ;;  %v2948_v10 = vmax.f32 %v2928_v32, 0.0 }
 0x6ca   :  { %v2931_v2 = vadd.f32 %v4361_v28, %v5976_v44  ;;  %v4755_v44 = vld [vmem:[%s6057_s3 + $0x600] ss:$8 sps:$4 sm:$0xff]  }
 0x6cb   :  { %4472 = vmatprep.subr.bf16.mxu1 %v4755_v44 }
 0x6cc   :  { %v2949_v1 = vmax.f32 %v2931_v2, 0.0  ;;  %4473 = vmatpush3.bf16.msra.mxu1 %v4755_v44  ;;  %v3773_v2 = vld [vmem:[%s6059_s4 + $0xa] ss:$0 sm:$0xff] }
 0x6ce   :  { %v2957_v50 = vpack.c.bf16 %v2949_v1, %v2948_v10 }
 0x6d0   :  { %4455 = vmatmul.mubr.bf16.gmra.mxu0 %v2957_v50 }
 0x760   :  { %v4444_v39 = vpop.f32.mrf.mxu0 }
 0x761   :  { %v3074_v56 = vadd.f32 %v4444_v39, %v3747_v52 }
 0x762   :  { %v3065_v11 = vpop.f32.mrf.mxu0 }
 0x763   :  { %v3066_v62 = vadd.f32 %v3747_v52, %v3065_v11  ;;  %v3130_v41 = vmax.f32 %v3074_v56, 0.0 }
 0x764   :  { %v4445_v6 = vpop.f32.mrf.mxu0 }
 0x765   :  { %v3077_v25 = vadd.f32 %v4445_v6, %v3747_v52  ;;  %v3128_v30 = vmax.f32 %v3066_v62, 0.0 }
 0x766   :  { %v3068_v29 = vpop.f32.mrf.mxu0 }
 0x767   :  { %v3069_v3 = vadd.f32 %v3747_v52, %v3068_v29  ;;  %v3131_v22 = vmax.f32 %v3077_v25, 0.0 }
 0x769   :  { %v3129_v13 = vmax.f32 %v3069_v3, 0.0  ;;  %v3145_v14 = vpack.c.bf16 %v3131_v22, %v3130_v41 }
 0x76b   :  { %v3144_v35 = vpack.c.bf16 %v3129_v13, %v3128_v30 }
 0x76d   :  { %4474 = vmatprep.mubr.bf16.mxu1 %v3144_v35 }
 0x76e   :  { %4475 = vmatmul.mubr.bf16.vlgmr.msra.gmra.mxu1 %v3145_v14 }
 0x770   :  { %v4448_v47 = vpop.f32.mrf.mxu0 }
 0x771   :  { %v3090_v27 = vadd.f32 %v4448_v47, %v3747_v52 }
 0x772   :  { %v3081_v17 = vpop.f32.mrf.mxu0 }
 0x773   :  { %v3082_v63 = vadd.f32 %v3747_v52, %v3081_v17  ;;  %v3134_v55 = vmax.f32 %v3090_v27, 0.0 }
 0x774   :  { %v4449_v7 = vpop.f32.mrf.mxu0 }
 0x775   :  { %v3093_v43 = vadd.f32 %v4449_v7, %v3747_v52  ;;  %v3132_v0 = vmax.f32 %v3082_v63, 0.0 }
 0x776   :  { %v3084_v42 = vpop.f32.mrf.mxu0 }
 0x777   :  { %v3085_v36 = vadd.f32 %v3747_v52, %v3084_v42  ;;  %v3135_v49 = vmax.f32 %v3093_v43, 0.0 }
 0x779   :  { %v3133_v51 = vmax.f32 %v3085_v36, 0.0  ;;  %v3147_v8 = vpack.c.bf16 %v3135_v49, %v3134_v55 }
 0x77b   :  { %v3146_v18 = vpack.c.bf16 %v3133_v51, %v3132_v0 }
 0x77d   :  { %4478 = vmatprep.mubr.bf16.mxu1 %v3146_v18 }
 0x77e   :  { %4479 = vmatmul.mubr.bf16.gmra.mxu1 %v3147_v8 }
 0x780   :  { %v4452_v23 = vpop.f32.mrf.mxu0 }
 0x781   :  { %v3106_v15 = vadd.f32 %v4452_v23, %v3747_v52 }
 0x782   :  { %v3097_v57 = vpop.f32.mrf.mxu0 }
 0x783   :  { %v3098_v60 = vadd.f32 %v3747_v52, %v3097_v57  ;;  %v3138_v58 = vmax.f32 %v3106_v15, 0.0 }
 0x784   :  { %v4453_v26 = vpop.f32.mrf.mxu0 }
 0x785   :  { %v3109_v31 = vadd.f32 %v4453_v26, %v3747_v52  ;;  %v3136_v59 = vmax.f32 %v3098_v60, 0.0 }
 0x786   :  { %v3100_v46 = vpop.f32.mrf.mxu0 }
 0x787   :  { %v3101_v4 = vadd.f32 %v3747_v52, %v3100_v46  ;;  %v3139_v61 = vmax.f32 %v3109_v31, 0.0 }
 0x789   :  { %v3137_v20 = vmax.f32 %v3101_v4, 0.0  ;;  %v3149_v54 = vpack.c.bf16 %v3139_v61, %v3138_v58 }
 0x78b   :  { %v3148_v12 = vpack.c.bf16 %v3137_v20, %v3136_v59 }
 0x78d   :  { %4482 = vmatprep.mubr.bf16.mxu1 %v3148_v12 }
 0x78e   :  { %4483 = vmatmul.mubr.bf16.gmra.mxu1 %v3149_v54 }
 0x790   :  { %v4456_v24 = vpop.f32.mrf.mxu0 }
 0x791   :  { %v3122_v40 = vadd.f32 %v4456_v24, %v3747_v52 }
 0x792   :  { %v3113_v38 = vpop.f32.mrf.mxu0 }
 0x793   :  { %v3114_v48 = vadd.f32 %v3747_v52, %v3113_v38  ;;  %v3142_v45 = vmax.f32 %v3122_v40, 0.0 }
 0x794   :  { %v4457_v37 = vpop.f32.mrf.mxu0 }
 0x795   :  { %v3125_v5 = vadd.f32 %v4457_v37, %v3747_v52  ;;  %v3140_v53 = vmax.f32 %v3114_v48, 0.0 }
 0x796   :  { %v3116_v33 = vpop.f32.mrf.mxu0 }
 0x797   :  { %v3117_v21 = vadd.f32 %v3747_v52, %v3116_v33  ;;  %v3143_v34 = vmax.f32 %v3125_v5, 0.0 }
 0x799   :  { %v3141_v16 = vmax.f32 %v3117_v21, 0.0  ;;  %v3151_v28 = vpack.c.bf16 %v3143_v34, %v3142_v45 }
 0x79b   :  { %v3150_v32 = vpack.c.bf16 %v3141_v16, %v3140_v53 }
 0x79d   :  { %4486 = vmatprep.mubr.bf16.mxu1 %v3150_v32 }
 0x79e   :  { %4487 = vmatmul.mubr.bf16.gmra.mxu1 %v3151_v28 }
 0x82e   :  { %v4476_v10 = vpop.f32.mrf.mxu1 }
 0x82f   :  { %v3268_v1 = vadd.f32 %v4476_v10, %v3773_v2 }
 0x830   :  { %v3259_v50 = vpop.f32.mrf.mxu1 }
 0x831   :  { %3324 = vst [vmem:[%s6062_s5 + $0x10] sm:$0xff] %v3268_v1  ;;  %v3260_v9 = vadd.f32 %v3773_v2, %v3259_v50 }
 0x832   :  { %v4477_v19 = vpop.f32.mrf.mxu1 }
 0x833   :  { %3322 = vst [vmem:[%s6062_s5] sm:$0xff] %v3260_v9  ;;  %v3271_v44 = vadd.f32 %v4477_v19, %v3773_v2 }
 0x834   :  { %v3262_v39 = vpop.f32.mrf.mxu1 }
 0x835   :  { %3325 = vst [vmem:[%s6062_s5 + $0x18] sm:$0xff] %v3271_v44  ;;  %v3263_v11 = vadd.f32 %v3773_v2, %v3262_v39 }
 0x837   :  { %3323 = vst [vmem:[%s6062_s5 + $0x8] sm:$0xff] %v3263_v11 }
 0x83e   :  { %v4480_v52 = vpop.f32.mrf.mxu1 }
 0x83f   :  { %v3284_v6 = vadd.f32 %v4480_v52, %v3773_v2 }
 0x840   :  { %v3275_v62 = vpop.f32.mrf.mxu1 }
 0x841   :  { %3328 = vst [vmem:[%s6062_s5 + $0x30] sm:$0xff] %v3284_v6  ;;  %v3276_v25 = vadd.f32 %v3773_v2, %v3275_v62 }
 0x842   :  { %v4481_v56 = vpop.f32.mrf.mxu1 }
 0x843   :  { %3326 = vst [vmem:[%s6062_s5 + $0x20] sm:$0xff] %v3276_v25  ;;  %v3287_v29 = vadd.f32 %v4481_v56, %v3773_v2 }
 0x844   :  { %v3278_v3 = vpop.f32.mrf.mxu1 }
 0x845   :  { %3329 = vst [vmem:[%s6062_s5 + $0x38] sm:$0xff] %v3287_v29  ;;  %v3279_v22 = vadd.f32 %v3773_v2, %v3278_v3 }
 0x847   :  { %3327 = vst [vmem:[%s6062_s5 + $0x28] sm:$0xff] %v3279_v22 }
 0x84e   :  { %v4484_v30 = vpop.f32.mrf.mxu1 }
 0x84f   :  { %v3300_v13 = vadd.f32 %v4484_v30, %v3773_v2 }
 0x850   :  { %v3291_v41 = vpop.f32.mrf.mxu1 }
 0x851   :  { %3332 = vst [vmem:[%s6062_s5 + $0x50] sm:$0xff] %v3300_v13  ;;  %v3292_v35 = vadd.f32 %v3773_v2, %v3291_v41 }
 0x852   :  { %v4485_v14 = vpop.f32.mrf.mxu1 }
 0x853   :  { %3330 = vst [vmem:[%s6062_s5 + $0x40] sm:$0xff] %v3292_v35  ;;  %v3303_v47 = vadd.f32 %v4485_v14, %v3773_v2 }
 0x854   :  { %v3294_v17 = vpop.f32.mrf.mxu1 }
 0x855   :  { %3333 = vst [vmem:[%s6062_s5 + $0x58] sm:$0xff] %v3303_v47  ;;  %v3295_v7 = vadd.f32 %v3773_v2, %v3294_v17 }
 0x857   :  { %3331 = vst [vmem:[%s6062_s5 + $0x48] sm:$0xff] %v3295_v7 }
 0x85e   :  { %v4488_v63 = vpop.f32.mrf.mxu1 }
 0x85f   :  { %v3316_v43 = vadd.f32 %v4488_v63, %v3773_v2 }
 0x860   :  { %v3307_v27 = vpop.f32.mrf.mxu1 }
 0x861   :  { %3336 = vst [vmem:[%s6062_s5 + $0x70] sm:$0xff] %v3316_v43  ;;  %v3308_v42 = vadd.f32 %v3773_v2, %v3307_v27 }
 0x862   :  { %v4489_v36 = vpop.f32.mrf.mxu1 }
 0x863   :  { %3334 = vst [vmem:[%s6062_s5 + $0x60] sm:$0xff] %v3308_v42  ;;  %v3319_v49 = vadd.f32 %v4489_v36, %v3773_v2 }
 0x864   :  { %v3310_v0 = vpop.f32.mrf.mxu1 }
 0x865   :  { %3337 = vst [vmem:[%s6062_s5 + $0x78] sm:$0xff] %v3319_v49  ;;  %v3311_v51 = vadd.f32 %v3773_v2, %v3310_v0 }
 0x867   :  { %3335 = vst [vmem:[%s6062_s5 + $0x68] sm:$0xff] %v3311_v51 }

</bundles_post_ra>
